<compile_context>
chip_gen: v7x
topology: tpu7x:2x2x1
jax: 0.10.0
libtpu: 0.0.40
codegen_flags: <defaults>
</compile_context>

<pallas_src>
import math

import jax
import jax.numpy as jnp
import numpy as np
from jax.experimental import pallas as pl
from jax.experimental.pallas import tpu as pltpu


# ---------------------------------------------------------------------------
# Generation-aware tiling helpers
# ---------------------------------------------------------------------------
def _vmem_capacity_bytes() -> int:
    try:
        return int(pltpu.get_tpu_info().vmem_capacity_bytes)
    except Exception:
        return 64 << 20  # be conservative (v7x physical VMEM per TensorCore)


def _pick_lane_tile(n_lanes: int, per_lane_bytes: int, fixed_bytes: int):
    """Return (lane_tile, padded_lane_extent).

    Picks the largest 128-multiple tile that (a) fits inside ~half of this
    generation's physical VMEM once the TM-independent residents are subtracted,
    (b) divides the 128-padded lane extent (unmasked lane-dense stores), and
    (c) leaves >= 2 grid steps when there is enough work (v7x has 2 TensorCores).
    """
    vmem = _vmem_capacity_bytes()
    target = 1024 if vmem >= (128 << 20) else 512        # v5e/v6e vs v7x
    budget = vmem // 2 - fixed_bytes
    cap = max(128, (budget // max(per_lane_bytes, 1)) // 128 * 128)
    target = min(target, cap)
    if n_lanes <= 128:
        return n_lanes, n_lanes          # tiny problem: one (possibly masked) tile
    pad = -(-n_lanes // 128) * 128
    hi = min(target, max(128, (pad // 2) // 128 * 128))  # guarantee >= 2 grid steps
    for t in range(hi, 127, -128):
        if pad % t == 0:
            return t, pad
    t = hi
    return t, -(-n_lanes // t) * t


# ---------------------------------------------------------------------------
# Fused kernel: diffusion chain + concat + 1x1 projection (+ bias)
# ---------------------------------------------------------------------------
def _gcn_diff_kernel(x_ref, a_ref, wx_ref, wh_ref, b_ref, o_ref, h_ref):
    # Static shapes (T = lane tile):
    #   x_ref : (C*V, T)                rows c*V + v
    #   a_ref : (S, C*V, C*V)           kron(I_C, A_s^T) per support
    #   wx_ref: (Cout*V, C*V)           block-expanded weight, term-0 (x) columns
    #   wh_ref: (Cout*V, order*S*C*V)   block-expanded weight, diffusion-term columns
    #   b_ref : (Cout*V, 1)
    #   o_ref : (Cout*V, T)             rows co*V + v
    #   h_ref : (order*S*C*V, T)        f32 scratch: every diffusion power, resident
    S, CV, _ = a_ref.shape
    HV, _ = h_ref.shape
    order = HV // (CV * S)

    # ---- diffusion chain: one kron-batched matmul per (support, power) ----------
    # Term (s, k) lives at scratch rows [(s*order + k)*CV : +CV); term 0 (== x) is
    # never copied -- k == 0 reads straight from x_ref.
    for s in range(S):
        a = a_ref[s]                                                   # (CV, CV)
        for k in range(order):
            if k == 0:
                src = x_ref[...]
            else:
                src = h_ref[pl.ds((s * order + k - 1) * CV, CV), :]
            h_ref[pl.ds((s * order + k) * CV, CV), :] = jnp.dot(
                a, src, preferred_element_type=jnp.float32)

    # ---- fused concat + 1x1 projection + bias: two dense MXU matmuls ------------
    o = jnp.dot(wx_ref[...], x_ref[...], preferred_element_type=jnp.float32)
    o = o + jnp.dot(wh_ref[...], h_ref[...], preferred_element_type=jnp.float32)
    o_ref[...] = (o + b_ref[...]).astype(o_ref.dtype)


# ---------------------------------------------------------------------------
# Wrapper: weight/support expansion, layout choice, pallas_call
# ---------------------------------------------------------------------------
def gcn_diff_forward(x, supports, proj_w, proj_b, order=2):
    """x: (N, C, V, L); supports: list of (V, V); proj_w: (Cout, (order*S+1)*C);
    proj_b: (Cout,)  ->  (N, Cout, V, L)."""
    N, C, V, L = x.shape
    S = len(supports)
    Cout, Ctot = proj_w.shape
    assert Ctot == (order * S + 1) * C, (Ctot, order, S, C)

    CV = C * V
    CoutV = Cout * V
    CHV = (Ctot - C) * V                    # rows of the diffusion-term scratch

    f32 = jnp.float32
    # kron(I_C, A^T) per support: folds the per-channel loop into one matmul.
    a_blk = jnp.stack([jnp.kron(jnp.eye(C, dtype=f32), a.T.astype(f32))
                       for a in supports])                          # (S, CV, CV)
    # Block-expanded projection weight: W'[o*V+v, c*V+u] = W[o, c] * (u == v).
    eye_v = jnp.eye(V, dtype=f32)
    wexp = jnp.einsum('oc,vu->ovcu', proj_w.astype(f32), eye_v).reshape(CoutV, Ctot * V)
    wx = wexp[:, :CV]                       # columns of term 0 (x itself)
    wh = wexp[:, CV:]                       # columns of all diffusion terms
    bexp = jnp.repeat(proj_b.astype(f32), V).reshape(CoutV, 1)

    itemsize = 4
    per_lane = itemsize * (2 * CV + 2 * CoutV + CHV)     # dbl-buffered x/o + scratch
    fixed = itemsize * 2 * (S * CV * CV + CoutV * CV + CoutV * CHV + CoutV)

    in_arrays = (a_blk, wx, wh, bexp)
    native_layout = L >= 128                # lane-dense on L alone -> no transposes

    if native_layout:
        TL, L_pad = _pick_lane_tile(L, per_lane, fixed)
        x_in = x.reshape(N, CV, L)                               # free reshape
        if L_pad != L:
            x_in = jnp.pad(x_in, ((0, 0), (0, 0), (0, L_pad - L)))
        grid = (N, L_pad // TL)
        total_lanes = N * L_pad
        in_specs = [
            pl.BlockSpec((None, CV, TL), lambda n, lt: (n, 0, lt)),
            pl.BlockSpec((S, CV, CV), lambda n, lt: (0, 0, 0)),
            pl.BlockSpec((CoutV, CV), lambda n, lt: (0, 0)),
            pl.BlockSpec((CoutV, CHV), lambda n, lt: (0, 0)),
            pl.BlockSpec((CoutV, 1), lambda n, lt: (0, 0)),
        ]
        out_spec = pl.BlockSpec((None, CoutV, TL), lambda n, lt: (n, 0, lt))
        out_shape = jax.ShapeDtypeStruct((N, CoutV, L_pad), x.dtype)
        dim_sem = ("parallel", "parallel")
        lane_tile = TL
        call_inputs = (x_in,) + in_arrays
    else:
        # Small L: fuse batch and seq into the lane axis m = n*L + l.
        M = N * L
        TM, M_pad = _pick_lane_tile(M, per_lane, fixed)
        x_in = jnp.transpose(x, (1, 2, 0, 3)).reshape(CV, M)     # rows c*V + v
        if M_pad != M:
            x_in = jnp.pad(x_in, ((0, 0), (0, M_pad - M)))
        grid = (M_pad // TM,)
        total_lanes = M_pad
        in_specs = [
            pl.BlockSpec((CV, TM), lambda i: (0, i)),
            pl.BlockSpec((S, CV, CV), lambda i: (0, 0, 0)),
            pl.BlockSpec((CoutV, CV), lambda i: (0, 0)),
            pl.BlockSpec((CoutV, CHV), lambda i: (0, 0)),
            pl.BlockSpec((CoutV, 1), lambda i: (0, 0)),
        ]
        out_spec = pl.BlockSpec((CoutV, TM), lambda i: (0, i))
        out_shape = jax.ShapeDtypeStruct((CoutV, M_pad), x.dtype)
        dim_sem = ("parallel",)
        lane_tile = TM
        call_inputs = (x_in,) + in_arrays

    needed = fixed + per_lane * lane_tile
    vmem_limit = int(min(_vmem_capacity_bytes(),
                         max(2 * needed + (8 << 20), 32 << 20)))

    flops = (2 * S * (CHV // (S * CV)) * CV * CV * total_lanes
             + 2 * CoutV * (CV + CHV) * total_lanes)
    bytes_accessed = itemsize * (CV * total_lanes + S * CV * CV + CoutV * CV
                                 + CoutV * CHV + CoutV + CoutV * total_lanes)

    out_raw = pl.pallas_call(
        _gcn_diff_kernel,
        out_shape=out_shape,
        grid_spec=pltpu.PrefetchScalarGridSpec(
            num_scalar_prefetch=0,
            grid=grid,
            in_specs=in_specs,
            out_specs=out_spec,
            scratch_shapes=[pltpu.VMEM((CHV, lane_tile), jnp.float32)],
        ),
        compiler_params=pltpu.CompilerParams(
            dimension_semantics=dim_sem,
            vmem_limit_bytes=vmem_limit),
        cost_estimate=pl.CostEstimate(
            flops=flops, transcendentals=0, bytes_accessed=bytes_accessed),
    )(*call_inputs)

    if native_layout:
        out = out_raw[:, :, :L].reshape(N, Cout, V, L)           # free reshape
    else:
        M = N * L
        out = out_raw[:, :M].reshape(Cout, V, N, L).transpose(2, 0, 1, 3)
    # F.dropout with training=False -> identity (inference semantics)
    return out


# ---------------------------------------------------------------------------
# Pure-JAX reference (for correctness check)
# ---------------------------------------------------------------------------
def gcn_diff_reference(x, supports, proj_w, proj_b, order=2):
    out = [x]
    for a in supports:
        x1 = jnp.einsum('ncvl,vw->ncwl', x, a)
        out.append(x1)
        for _k in range(2, order + 1):
            x2 = jnp.einsum('ncvl,vw->ncwl', x1, a)
            out.append(x2)
            x1 = x2
    h = jnp.concatenate(out, axis=1)
    o = jnp.einsum('oc,ncvl->novl', proj_w, h) + proj_b[None, :, None, None]
    return o


if __name__ == "__main__":
    def run_case(N, C_IN, V, L, S, ORDER, C_OUT, seed=0):
        C_TOTAL = (ORDER * S + 1) * C_IN
        key = jax.random.PRNGKey(seed)
        kx, kw, kb, *ka = jax.random.split(key, 3 + S)
        x = jax.random.normal(kx, (N, C_IN, V, L), dtype=jnp.float32)
        supports = [jax.random.uniform(k, (V, V), dtype=jnp.float32) / V for k in ka]
        bound = 1.0 / math.sqrt(C_TOTAL)
        proj_w = jax.random.uniform(kw, (C_OUT, C_TOTAL), dtype=jnp.float32,
                                    minval=-bound, maxval=bound)
        proj_b = jax.random.uniform(kb, (C_OUT,), dtype=jnp.float32,
                                    minval=-bound, maxval=bound)

        out = jax.block_until_ready(
            gcn_diff_forward(x, supports, proj_w, proj_b, order=ORDER))
        ref = jax.block_until_ready(
            gcn_diff_reference(x, supports, proj_w, proj_b, order=ORDER))
        assert out.shape == (N, C_OUT, V, L), out.shape
        np.testing.assert_allclose(np.asarray(out), np.asarray(ref),
                                   rtol=1e-5, atol=1e-5)

    # Small, module-consistent shapes -> fused N*L lane path (L too small alone).
    run_case(N=2, C_IN=4, V=16, L=8, S=3, ORDER=2, C_OUT=32, seed=0)
    # Lane-dense L -> native (N, C*V, L) layout path (no wrapper HBM transposes).
    run_case(N=2, C_IN=4, V=16, L=128, S=3, ORDER=2, C_OUT=32, seed=1)

    print("KERNEL_OK")
</pallas_src>

<mosaic_0001>
module attributes {stable_mosaic.version = 11 : i64} {
  func.func @_gcn_diff_kernel(%arg0: i32, %arg1: memref<64x16xf32, #tpu.memory_space<vmem>>, %arg2: memref<3x64x64xf32, #tpu.memory_space<vmem>>, %arg3: memref<512x64xf32, #tpu.memory_space<vmem>>, %arg4: memref<512x384xf32, #tpu.memory_space<vmem>>, %arg5: memref<512x1xf32, #tpu.memory_space<vmem>>, %arg6: memref<512x16xf32, #tpu.memory_space<vmem>>, %arg7: memref<384x16xf32, #tpu.memory_space<vmem>>) attributes {dimension_semantics = [#tpu.dimension_semantics<parallel>], iteration_bounds = array<i64: 1>, scalar_prefetch = 0 : i64, scratch_operands = 1 : i64, tpu.core_type = #tpu.core_type<tc>, window_params = [{transform_indices = @transform_0, window_bounds = array<i64: 64, 16>}, {pipeline_mode = #tpu.pipeline_mode<synchronous>, transform_indices = @transform_1, window_bounds = array<i64: 3, 64, 64>}, {pipeline_mode = #tpu.pipeline_mode<synchronous>, transform_indices = @transform_2, window_bounds = array<i64: 512, 64>}, {pipeline_mode = #tpu.pipeline_mode<synchronous>, transform_indices = @transform_3, window_bounds = array<i64: 512, 384>}, {pipeline_mode = #tpu.pipeline_mode<synchronous>, transform_indices = @transform_4, window_bounds = array<i64: 512, 1>}, {transform_indices = @transform_5, window_bounds = array<i64: 512, 16>}]} {
    %c0 = arith.constant 0 : index
    %c0_0 = arith.constant 0 : index
    %c0_1 = arith.constant 0 : index
    %0 = vector.load %arg2[%c0, %c0_0, %c0_1] : memref<3x64x64xf32, #tpu.memory_space<vmem>>, vector<1x64x64xf32>
    %1 = vector.shape_cast %0 : vector<1x64x64xf32> to vector<64x64xf32>
    %c0_2 = arith.constant 0 : index
    %c0_3 = arith.constant 0 : index
    %2 = vector.load %arg1[%c0_2, %c0_3] : memref<64x16xf32, #tpu.memory_space<vmem>>, vector<64x16xf32>
    %cst = arith.constant dense<0.000000e+00> : vector<64x16xf32>
    %3 = tpu.matmul %1, %2, %cst {dimension_numbers = #tpu.dot_dimension_numbers<[1], [0], [0], [1], [0, 0, 1, 1], [], []>} : vector<64x64xf32>, vector<64x16xf32>, vector<64x16xf32> -> vector<64x16xf32>
    %c0_4 = arith.constant 0 : index
    %c0_5 = arith.constant 0 : index
    %4 = vector.load %arg7[%c0_4, %c0_5] : memref<384x16xf32, #tpu.memory_space<vmem>>, vector<64x16xf32>
    tpu.vector_store %arg7[%c0_4, %c0_5], %3 {strides = array<i32>} : memref<384x16xf32, #tpu.memory_space<vmem>>, vector<64x16xf32>,
    %c0_6 = arith.constant 0 : index
    %c0_7 = arith.constant 0 : index
    %5 = vector.load %arg7[%c0_6, %c0_7] : memref<384x16xf32, #tpu.memory_space<vmem>>, vector<64x16xf32>
    %cst_8 = arith.constant dense<0.000000e+00> : vector<64x16xf32>
    %6 = tpu.matmul %1, %5, %cst_8 {dimension_numbers = #tpu.dot_dimension_numbers<[1], [0], [0], [1], [0, 0, 1, 1], [], []>} : vector<64x64xf32>, vector<64x16xf32>, vector<64x16xf32> -> vector<64x16xf32>
    %c64 = arith.constant 64 : index
    %c0_9 = arith.constant 0 : index
    %7 = vector.load %arg7[%c64, %c0_9] : memref<384x16xf32, #tpu.memory_space<vmem>>, vector<64x16xf32>
    tpu.vector_store %arg7[%c64, %c0_9], %6 {strides = array<i32>} : memref<384x16xf32, #tpu.memory_space<vmem>>, vector<64x16xf32>,
    %c1 = arith.constant 1 : index
    %c0_10 = arith.constant 0 : index
    %c0_11 = arith.constant 0 : index
    %8 = vector.load %arg2[%c1, %c0_10, %c0_11] : memref<3x64x64xf32, #tpu.memory_space<vmem>>, vector<1x64x64xf32>
    %9 = vector.shape_cast %8 : vector<1x64x64xf32> to vector<64x64xf32>
    %c0_12 = arith.constant 0 : index
    %c0_13 = arith.constant 0 : index
    %10 = vector.load %arg1[%c0_12, %c0_13] : memref<64x16xf32, #tpu.memory_space<vmem>>, vector<64x16xf32>
    %cst_14 = arith.constant dense<0.000000e+00> : vector<64x16xf32>
    %11 = tpu.matmul %9, %10, %cst_14 {dimension_numbers = #tpu.dot_dimension_numbers<[1], [0], [0], [1], [0, 0, 1, 1], [], []>} : vector<64x64xf32>, vector<64x16xf32>, vector<64x16xf32> -> vector<64x16xf32>
    %c128 = arith.constant 128 : index
    %c0_15 = arith.constant 0 : index
    %12 = vector.load %arg7[%c128, %c0_15] : memref<384x16xf32, #tpu.memory_space<vmem>>, vector<64x16xf32>
    tpu.vector_store %arg7[%c128, %c0_15], %11 {strides = array<i32>} : memref<384x16xf32, #tpu.memory_space<vmem>>, vector<64x16xf32>,
    %c128_16 = arith.constant 128 : index
    %c0_17 = arith.constant 0 : index
    %13 = vector.load %arg7[%c128_16, %c0_17] : memref<384x16xf32, #tpu.memory_space<vmem>>, vector<64x16xf32>
    %cst_18 = arith.constant dense<0.000000e+00> : vector<64x16xf32>
    %14 = tpu.matmul %9, %13, %cst_18 {dimension_numbers = #tpu.dot_dimension_numbers<[1], [0], [0], [1], [0, 0, 1, 1], [], []>} : vector<64x64xf32>, vector<64x16xf32>, vector<64x16xf32> -> vector<64x16xf32>
    %c192 = arith.constant 192 : index
    %c0_19 = arith.constant 0 : index
    %15 = vector.load %arg7[%c192, %c0_19] : memref<384x16xf32, #tpu.memory_space<vmem>>, vector<64x16xf32>
    tpu.vector_store %arg7[%c192, %c0_19], %14 {strides = array<i32>} : memref<384x16xf32, #tpu.memory_space<vmem>>, vector<64x16xf32>,
    %c2 = arith.constant 2 : index
    %c0_20 = arith.constant 0 : index
    %c0_21 = arith.constant 0 : index
    %16 = vector.load %arg2[%c2, %c0_20, %c0_21] : memref<3x64x64xf32, #tpu.memory_space<vmem>>, vector<1x64x64xf32>
    %17 = vector.shape_cast %16 : vector<1x64x64xf32> to vector<64x64xf32>
    %c0_22 = arith.constant 0 : index
    %c0_23 = arith.constant 0 : index
    %18 = vector.load %arg1[%c0_22, %c0_23] : memref<64x16xf32, #tpu.memory_space<vmem>>, vector<64x16xf32>
    %cst_24 = arith.constant dense<0.000000e+00> : vector<64x16xf32>
    %19 = tpu.matmul %17, %18, %cst_24 {dimension_numbers = #tpu.dot_dimension_numbers<[1], [0], [0], [1], [0, 0, 1, 1], [], []>} : vector<64x64xf32>, vector<64x16xf32>, vector<64x16xf32> -> vector<64x16xf32>
    %c256 = arith.constant 256 : index
    %c0_25 = arith.constant 0 : index
    %20 = vector.load %arg7[%c256, %c0_25] : memref<384x16xf32, #tpu.memory_space<vmem>>, vector<64x16xf32>
    tpu.vector_store %arg7[%c256, %c0_25], %19 {strides = array<i32>} : memref<384x16xf32, #tpu.memory_space<vmem>>, vector<64x16xf32>,
    %c256_26 = arith.constant 256 : index
    %c0_27 = arith.constant 0 : index
    %21 = vector.load %arg7[%c256_26, %c0_27] : memref<384x16xf32, #tpu.memory_space<vmem>>, vector<64x16xf32>
    %cst_28 = arith.constant dense<0.000000e+00> : vector<64x16xf32>
    %22 = tpu.matmul %17, %21, %cst_28 {dimension_numbers = #tpu.dot_dimension_numbers<[1], [0], [0], [1], [0, 0, 1, 1], [], []>} : vector<64x64xf32>, vector<64x16xf32>, vector<64x16xf32> -> vector<64x16xf32>
    %c320 = arith.constant 320 : index
    %c0_29 = arith.constant 0 : index
    %23 = vector.load %arg7[%c320, %c0_29] : memref<384x16xf32, #tpu.memory_space<vmem>>, vector<64x16xf32>
    tpu.vector_store %arg7[%c320, %c0_29], %22 {strides = array<i32>} : memref<384x16xf32, #tpu.memory_space<vmem>>, vector<64x16xf32>,
    %c0_30 = arith.constant 0 : index
    %c0_31 = arith.constant 0 : index
    %24 = vector.load %arg3[%c0_30, %c0_31] : memref<512x64xf32, #tpu.memory_space<vmem>>, vector<512x64xf32>
    %c0_32 = arith.constant 0 : index
    %c0_33 = arith.constant 0 : index
    %25 = vector.load %arg1[%c0_32, %c0_33] : memref<64x16xf32, #tpu.memory_space<vmem>>, vector<64x16xf32>
    %cst_34 = arith.constant dense<0.000000e+00> : vector<512x16xf32>
    %26 = tpu.matmul %24, %25, %cst_34 {dimension_numbers = #tpu.dot_dimension_numbers<[1], [0], [0], [1], [0, 0, 1, 1], [], []>} : vector<512x64xf32>, vector<64x16xf32>, vector<512x16xf32> -> vector<512x16xf32>
    %c0_35 = arith.constant 0 : index
    %c0_36 = arith.constant 0 : index
    %27 = vector.load %arg4[%c0_35, %c0_36] : memref<512x384xf32, #tpu.memory_space<vmem>>, vector<512x384xf32>
    %c0_37 = arith.constant 0 : index
    %c0_38 = arith.constant 0 : index
    %28 = vector.load %arg7[%c0_37, %c0_38] : memref<384x16xf32, #tpu.memory_space<vmem>>, vector<384x16xf32>
    %cst_39 = arith.constant dense<0.000000e+00> : vector<512x16xf32>
    %29 = tpu.matmul %27, %28, %cst_39 {dimension_numbers = #tpu.dot_dimension_numbers<[1], [0], [0], [1], [0, 0, 1, 1], [], []>} : vector<512x384xf32>, vector<384x16xf32>, vector<512x16xf32> -> vector<512x16xf32>
    %30 = arith.addf %26, %29 : vector<512x16xf32>
    %c0_40 = arith.constant 0 : index
    %c0_41 = arith.constant 0 : index
    %31 = vector.load %arg5[%c0_40, %c0_41] : memref<512x1xf32, #tpu.memory_space<vmem>>, vector<512x1xf32>
    %32 = vector.broadcast %31 : vector<512x1xf32> to vector<512x16xf32>
    %33 = arith.addf %30, %32 : vector<512x16xf32>
    %c0_42 = arith.constant 0 : index
    %c0_43 = arith.constant 0 : index
    %34 = vector.load %arg6[%c0_42, %c0_43] : memref<512x16xf32, #tpu.memory_space<vmem>>, vector<512x16xf32>
    tpu.vector_store %arg6[%c0_42, %c0_43], %33 {strides = array<i32>} : memref<512x16xf32, #tpu.memory_space<vmem>>, vector<512x16xf32>,
    return
  }
  func.func @transform_0(%arg0: i32) -> (i32, i32) {
    %c0_i32 = arith.constant 0 : i32
    %c0_i32_0 = arith.constant 0 : i32
    return %c0_i32, %arg0 : i32, i32
  }
  func.func @transform_1(%arg0: i32) -> (i32, i32, i32) {
    %c0_i32 = arith.constant 0 : i32
    %c0_i32_0 = arith.constant 0 : i32
    %c0_i32_1 = arith.constant 0 : i32
    %c0_i32_2 = arith.constant 0 : i32
    return %c0_i32, %c0_i32_0, %c0_i32_1 : i32, i32, i32
  }
  func.func @transform_2(%arg0: i32) -> (i32, i32) {
    %c0_i32 = arith.constant 0 : i32
    %c0_i32_0 = arith.constant 0 : i32
    %c0_i32_1 = arith.constant 0 : i32
    return %c0_i32, %c0_i32_0 : i32, i32
  }
  func.func @transform_3(%arg0: i32) -> (i32, i32) {
    %c0_i32 = arith.constant 0 : i32
    %c0_i32_0 = arith.constant 0 : i32
    %c0_i32_1 = arith.constant 0 : i32
    return %c0_i32, %c0_i32_0 : i32, i32
  }
  func.func @transform_4(%arg0: i32) -> (i32, i32) {
    %c0_i32 = arith.constant 0 : i32
    %c0_i32_0 = arith.constant 0 : i32
    %c0_i32_1 = arith.constant 0 : i32
    return %c0_i32, %c0_i32_0 : i32, i32
  }
  func.func @transform_5(%arg0: i32) -> (i32, i32) {
    %c0_i32 = arith.constant 0 : i32
    %c0_i32_0 = arith.constant 0 : i32
    return %c0_i32, %arg0 : i32, i32
  }
}

</mosaic_0001>

<bundles_post_ra>
// kernel: tpu_custom_call.1
= control target key start
LH: loop header
LB: loop body
LE: loop exit
PB: predicated region body
PF: predicated region fallthrough
CT: control target
= control target key end

     0   :  { %10 = vsyncpa [#allocation4], 0  ;;  %s4043_s18 = smov [#allocation3]   ;;  %s5575_s0 = inlined_call_operand.vmem [shape: f32[64,16], index: 0, kind: input, shape index: {}]   ;;  %s5576_s1 = inlined_call_operand.vmem [shape: f32[3,64,64], index: 1, kind: input, shape index: {}]   ;;  %s5577_s2 = inlined_call_operand.vmem [shape: f32[512,64], index: 2, kind: input, shape index: {}]   ;;  %s5578_s3 = inlined_call_operand.hbm [shape: f32[512,384], index: 3, kind: input, shape index: {}]   ;;  %s5579_s4 = inlined_call_operand.vmem [shape: f32[512,1], index: 4, kind: input, shape index: {}]   ;;  %s5580_s5 = inlined_call_operand.vmem [shape: f32[512,16], index: 5, kind: output, shape index: {}]  }
   0x1   :  { %s22_s19 = sshll.u32 %s4043_s18, 4  ;;  %s4019_s22 = scalar_lea.hbm %s5578_s3, 24576  ;;  %s23_s19 = int_to_ptr.vmem [resolvable:$true] %s22_s19 }
   0x2   :  { %p4020_p0 = scmp.ne.s32.totalorder %s5578_s3, %s4019_s22  ;;  %p4023_p1 = scmp.lt.u32.totalorder %s4019_s22, %s5578_s3 }
   0x4   :  { %p4025_p2 = pnand %p4023_p1, %p4020_p0 }
   0x6   :  { %4028 = shalt.err (!%p4025_p2)
}
   0x7   :  { %s4029_s27 = scalar_lea.vmem %s23_s19, 24576  ;;  %p4034_p4 = scmp.lt.s32.totalorder %s23_s19, %s23_s19 }
   0x8   :  { %p4030_p3 = scmp.ne.s32.totalorder %s23_s19, %s4029_s27  ;;  %p4035_p5 = scmp.lt.s32.totalorder %s4029_s27, %s4029_s27 }
   0xa   :  { %p4036_p6 = por %p4035_p5, %p4034_p4 }
   0xc   :  { %p4037_p7 = pnand %p4036_p6, %p4030_p3 }
   0xe   :  { %4040 = shalt.err (!%p4037_p7)
}
   0xf   :  { %s4044_s28 = smov 384   ;;  %s4045_s29 = smov 24  }
  0x10   :  { %28 = dma.hbm_to_vmem [thread:$0]  %s5578_s3, 24576, %s23_s19, [#allocation4], %s4044_s28, %s4044_s28, %s4045_s29  }
  0x11   :  { %4041 = dma.done.wait [#allocation4], 24576  }
  0x12   :  { %4042 = vsyncadd [#allocation4], 4294942720  ;;  %v42_v0 = vld [vmem:[%s5575_s0] sm:$0xff]  ;;  %v43_v1 = vld [vmem:[%s5575_s0 + $0x8] sm:$0xff]  ;;  %vm50_vm0 = vcmask 523264   ;;  %v4046_v36 = vmov 0.0|0.0  }
  0x13   :  { %v44_v2 = vld [vmem:[%s5575_s0 + $0x10] sm:$0xff]  ;;  %v4099_v3 = vpack.c.bf16 %v43_v1, %v42_v0  ;;  %v45_v4 = vld [vmem:[%s5575_s0 + $0x18] sm:$0xff]  ;;  %v46_v6 = vld [vmem:[%s5575_s0 + $0x20] sm:$0xff]  ;;  %vm180_vm1 = vcmask 130048  }
  0x14   :  { %v4104_v5 = vpack.c.bf16 %v45_v4, %v44_v2  ;;  %v47_v7 = vld [vmem:[%s5575_s0 + $0x28] sm:$0xff]  ;;  %v34_v8 = vld [vmem:[%s5576_s1] sm:$0xff]  ;;  %v48_v11 = vld [vmem:[%s5575_s0 + $0x30] sm:$0xff] }
  0x15   :  { %3821 = vmatprep.subr.bf16.mxu1 %v4099_v3  ;;  %3428 = vmatprep.mubr.msk.f32.mxu1 %vm50_vm0, %v34_v8  ;;  %v3828_v9 = vpack.c.bf16 %v47_v7, %v46_v6  ;;  %v4124_v10 = vld [vmem:[%s5576_s1 + $0x40] sm:$0xff]  ;;  %v49_v12 = vld [vmem:[%s5575_s0 + $0x38] sm:$0xff]  ;;  %v4140_v14 = vld [vmem:[%s5576_s1 + $0x8] sm:$0xff] }
  0x16   :  { %3823 = vmatpush3.bf16.msra.mxu1 %v4099_v3  ;;  %3853 = vmatprep.subr.bf16.mxu0 %v4099_v3  ;;  %v3832_v13 = vpack.c.bf16 %v49_v12, %v48_v11  ;;  %v4145_v15 = vld [vmem:[%s5576_s1 + $0x10] sm:$0xff]  ;;  %v4150_v16 = vld [vmem:[%s5576_s1 + $0x48] sm:$0xff]  ;;  %v4165_v18 = vld [vmem:[%s5576_s1 + $0x18] sm:$0xff] }
  0x17   :  { %3825 = vmatprep.subr.bf16.mxu1 %v4104_v5  ;;  %3855 = vmatpush3.bf16.msra.mxu0 %v4099_v3  ;;  %v4156_v17 = vld [vmem:[%s5576_s1 + $0x50] sm:$0xff]  ;;  %v4172_v19 = vld [vmem:[%s5576_s1 + $0x20] sm:$0xff]  ;;  %v4180_v20 = vld [vmem:[%s5576_s1 + $0x58] sm:$0xff] }
  0x18   :  { %3857 = vmatprep.subr.bf16.mxu0 %v4104_v5  ;;  %3484 = vmatprep.mubr.msk.f32.mxu0 %vm50_vm0, %v4124_v10  ;;  %v4186_v21 = vld [vmem:[%s5576_s1 + $0x60] sm:$0xff]  ;;  %v4195_v22 = vld [vmem:[%s5576_s1 + $0x28] sm:$0xff]  ;;  %v4202_v23 = vld [vmem:[%s5576_s1 + $0x30] sm:$0xff] }
  0x19   :  { %v4210_v24 = vld [vmem:[%s5576_s1 + $0x68] sm:$0xff]  ;;  %v4215_v25 = vld [vmem:[%s5576_s1 + $0x70] sm:$0xff]  ;;  %v4224_v26 = vld [vmem:[%s5576_s1 + $0x38] sm:$0xff] }
  0x1a   :  { %3827 = vmatpush3.bf16.msra.mxu1 %v4104_v5  ;;  %v4233_v27 = vld [vmem:[%s5576_s1 + $0x78] sm:$0xff]  ;;  %v4238_v28 = vld [vmem:[%s5576_s1 + $0x80] sm:$0xff]  ;;  %v4250_v29 = vld [vmem:[%s5576_s1 + $0x88] sm:$0xff] }
  0x1b   :  { %3829 = vmatprep.subr.bf16.mxu1 %v3828_v9  ;;  %3859 = vmatpush3.bf16.msra.mxu0 %v4104_v5  ;;  %v4255_v30 = vld [vmem:[%s5576_s1 + $0x90] sm:$0xff]  ;;  %v4264_v31 = vld [vmem:[%s5576_s1 + $0x98] sm:$0xff]  ;;  %v4269_v32 = vld [vmem:[%s5576_s1 + $0xa0] sm:$0xff] }
  0x1c   :  { %3861 = vmatprep.subr.bf16.mxu0 %v3828_v9  ;;  %v4278_v33 = vld [vmem:[%s5576_s1 + $0xa8] sm:$0xff]  ;;  %v4283_v34 = vld [vmem:[%s5576_s1 + $0xb0] sm:$0xff]  ;;  %v4292_v35 = vld [vmem:[%s5576_s1 + $0xb8] sm:$0xff] }
  0x1e   :  { %3831 = vmatpush3.bf16.msra.mxu1 %v3828_v9 }
  0x1f   :  { %3833 = vmatprep.subr.bf16.mxu1 %v3832_v13  ;;  %3863 = vmatpush3.bf16.msra.mxu0 %v3828_v9 }
  0x20   :  { %3865 = vmatprep.subr.bf16.mxu0 %v3832_v13 }
  0x22   :  { %3835 = vmatpush3.bf16.msra.mxu1 %v3832_v13 }
  0x23   :  { %3867 = vmatpush3.bf16.msra.mxu0 %v3832_v13 }
  0x24   :  { %3885 = vmatprep.subr.bf16.mxu0 %v4099_v3 }
  0x25   :  { %3429 = vmatmul.mubr.msk.f32.vlgmr.msra.gmra.mrb[0].mxu1 %vm50_vm0, %v4140_v14 }
  0x26   :  { %3431 = vmatprep.mubr.msk.f32.mxu1 %vm50_vm0, %v4145_v15  ;;  %3485 = vmatmul.mubr.msk.f32.vlgmr.msra.gmra.mrb[0].mxu0 %vm50_vm0, %v4150_v16 }
  0x27   :  { %3887 = vmatpush3.bf16.msra.mxu0 %v4099_v3  ;;  %3487 = vmatprep.mubr.msk.f32.mxu0 %vm50_vm0, %v4156_v17 }
  0x28   :  { %3889 = vmatprep.subr.bf16.mxu0 %v4104_v5 }
  0x29   :  { %3432 = vmatmul.mubr.msk.f32.gmra.mrb[2].mxu1 %vm50_vm0, %v4165_v18 }
  0x2a   :  { %3434 = vmatprep.mubr.msk.f32.mxu1 %vm50_vm0, %v4172_v19  ;;  %3488 = vmatmul.mubr.msk.f32.gmra.mrb[2].mxu0 %vm50_vm0, %v4180_v20 }
  0x2b   :  { %3891 = vmatpush3.bf16.msra.mxu0 %v4104_v5  ;;  %3490 = vmatprep.mubr.msk.f32.mxu0 %vm50_vm0, %v4186_v21 }
  0x2c   :  { %3893 = vmatprep.subr.bf16.mxu0 %v3828_v9 }
  0x2d   :  { %3435 = vmatmul.mubr.msk.f32.gmra.mrb[4].mxu1 %vm50_vm0, %v4195_v22 }
  0x2e   :  { %3437 = vmatprep.mubr.msk.f32.mxu1 %vm50_vm0, %v4202_v23  ;;  %3491 = vmatmul.mubr.msk.f32.gmra.mrb[4].mxu0 %vm50_vm0, %v4210_v24 }
  0x2f   :  { %3895 = vmatpush3.bf16.msra.mxu0 %v3828_v9  ;;  %3493 = vmatprep.mubr.msk.f32.mxu0 %vm50_vm0, %v4215_v25 }
  0x30   :  { %3897 = vmatprep.subr.bf16.mxu0 %v3832_v13 }
  0x31   :  { %3438 = vmatmul.mubr.msk.f32.gmra.mrb[6].mxu1 %vm50_vm0, %v4224_v26 }
  0x32   :  { %3494 = vmatmul.mubr.msk.f32.gmra.mrb[6].mxu0 %vm50_vm0, %v4233_v27  ;;  %3456 = vmatprep.mubr.msk.f32.mxu1 %vm50_vm0, %v34_v8 }
  0x33   :  { %3899 = vmatpush3.bf16.msra.mxu0 %v3832_v13  ;;  %3540 = vmatprep.mubr.msk.f32.mxu0 %vm50_vm0, %v4238_v28 }
  0x34   :  { %3916 = vmatprep.subr.bf16.mxu0 %v4046_v36 }
  0x36   :  { %3541 = vmatmul.mubr.msk.f32.vlgmr.msra.gmra.mrb[8].mxu0 %vm50_vm0, %v4250_v29 }
  0x37   :  { %3543 = vmatprep.mubr.msk.f32.mxu0 %vm50_vm0, %v4255_v30 }
  0x3a   :  { %3544 = vmatmul.mubr.msk.f32.gmra.mrb[10].mxu0 %vm50_vm0, %v4264_v31 }
  0x3b   :  { %3546 = vmatprep.mubr.msk.f32.mxu0 %vm50_vm0, %v4269_v32 }
  0x3e   :  { %3547 = vmatmul.mubr.msk.f32.gmra.mrb[12].mxu0 %vm50_vm0, %v4278_v33 }
  0x3f   :  { %3549 = vmatprep.mubr.msk.f32.mxu0 %vm50_vm0, %v4283_v34 }
  0x42   :  { %3550 = vmatmul.mubr.msk.f32.gmra.mrb[14].mxu0 %vm50_vm0, %v4292_v35 }
  0xf8   :  { %v3430_v37 = vpop.f32.mrb[0].mxu1 }
  0xf9   :  { %182 = vst.msk [vmem:[#allocation2 + $0x8] sm:$0xff] %vm180_vm1, %v3430_v37  ;;  %v141_v38 = vpop.f32.mrb[1].mxu1  ;;  %v3486_v39 = vpop.f32.mrb[0].mxu0 }
  0xfa   :  { %181 = vst.msk [vmem:[#allocation2] sm:$0xff] %vm180_vm1, %v141_v38  ;;  %457 = vst.msk [vmem:[#allocation2 + $0x88] sm:$0xff] %vm180_vm1, %v3486_v39  ;;  %v417_v40 = vpop.f32.mrb[1].mxu0 }
  0xfb   :  { %456 = vst.msk [vmem:[#allocation2 + $0x80] sm:$0xff] %vm180_vm1, %v417_v40 }
  0xfc   :  { %v3433_v41 = vpop.f32.mrb[2].mxu1 }
  0xfd   :  { %184 = vst.msk [vmem:[#allocation2 + $0x18] sm:$0xff] %vm180_vm1, %v3433_v41  ;;  %v151_v42 = vpop.f32.mrb[3].mxu1  ;;  %v3489_v43 = vpop.f32.mrb[2].mxu0 }
  0xfe   :  { %183 = vst.msk [vmem:[#allocation2 + $0x10] sm:$0xff] %vm180_vm1, %v151_v42  ;;  %459 = vst.msk [vmem:[#allocation2 + $0x98] sm:$0xff] %vm180_vm1, %v3489_v43  ;;  %v427_v44 = vpop.f32.mrb[3].mxu0 }
  0xff   :  { %458 = vst.msk [vmem:[#allocation2 + $0x90] sm:$0xff] %vm180_vm1, %v427_v44 }
 0x100   :  { %v3436_v45 = vpop.f32.mrb[4].mxu1  ;;  %v190_v46 = vld [vmem:[#allocation2 + $0x8] sm:$0xff] }
 0x101   :  { %186 = vst.msk [vmem:[#allocation2 + $0x28] sm:$0xff] %vm180_vm1, %v3436_v45  ;;  %v161_v47 = vpop.f32.mrb[5].mxu1  ;;  %v189_v48 = vld [vmem:[#allocation2] sm:$0xff]  ;;  %v3492_v49 = vpop.f32.mrb[4].mxu0  ;;  %v465_v1 = vld [vmem:[#allocation2 + $0x88] sm:$0xff] }
 0x102   :  { %185 = vst.msk [vmem:[#allocation2 + $0x20] sm:$0xff] %vm180_vm1, %v161_v47  ;;  %v3836_v50 = vpack.c.bf16 %v190_v46, %v189_v48  ;;  %461 = vst.msk [vmem:[#allocation2 + $0xa8] sm:$0xff] %vm180_vm1, %v3492_v49  ;;  %v437_v51 = vpop.f32.mrb[5].mxu0  ;;  %v464_v0 = vld [vmem:[#allocation2 + $0x80] sm:$0xff] }
 0x103   :  { %460 = vst.msk [vmem:[#allocation2 + $0xa0] sm:$0xff] %vm180_vm1, %v437_v51  ;;  %v4318_v8 = vpack.c.bf16 %v465_v1, %v464_v0  ;;  %v2519_v0 = vld [vmem:[%s5579_s4] sm:$0xff] }
 0x104   :  { %v3439_v52 = vpop.f32.mrb[6].mxu1  ;;  %3837 = vmatprep.subr.bf16.mxu1 %v3836_v50  ;;  %3918 = vmatpush1.bf16.msra.mxu0 %v3836_v50  ;;  %v192_v53 = vld [vmem:[#allocation2 + $0x18] sm:$0xff] }
 0x105   :  { %188 = vst.msk [vmem:[#allocation2 + $0x38] sm:$0xff] %vm180_vm1, %v3439_v52  ;;  %v171_v54 = vpop.f32.mrb[7].mxu1  ;;  %3839 = vmatpush3.bf16.msra.mxu1 %v3836_v50  ;;  %3919 = vmatprep.subr.bf16.mxu0 %v4046_v36  ;;  %v191_v55 = vld [vmem:[#allocation2 + $0x10] sm:$0xff]  ;;  %v3495_v56 = vpop.f32.mrb[6].mxu0  ;;  %v467_v12 = vld [vmem:[#allocation2 + $0x98] sm:$0xff] }
 0x106   :  { %187 = vst.msk [vmem:[#allocation2 + $0x30] sm:$0xff] %vm180_vm1, %v171_v54  ;;  %v3840_v57 = vpack.c.bf16 %v192_v53, %v191_v55  ;;  %463 = vst.msk [vmem:[#allocation2 + $0xb8] sm:$0xff] %vm180_vm1, %v3495_v56  ;;  %v447_v58 = vpop.f32.mrb[7].mxu0  ;;  %v466_v11 = vld [vmem:[#allocation2 + $0x90] sm:$0xff] }
 0x107   :  { %462 = vst.msk [vmem:[#allocation2 + $0xb0] sm:$0xff] %vm180_vm1, %v447_v58  ;;  %v4324_v37 = vpack.c.bf16 %v467_v12, %v466_v11  ;;  %v2524_v11 = vld [vmem:[%s5579_s4 + $0x28] sm:$0xff]  ;;  %v2523_v12 = vld [vmem:[%s5579_s4 + $0x20] sm:$0xff] }
 0x108   :  { %3841 = vmatprep.subr.bf16.mxu1 %v3840_v57  ;;  %3921 = vmatpush1.bf16.msra.mxu0 %v3840_v57  ;;  %v194_v59 = vld [vmem:[#allocation2 + $0x28] sm:$0xff] }
 0x109   :  { %3843 = vmatpush3.bf16.msra.mxu1 %v3840_v57  ;;  %3922 = vmatprep.subr.bf16.mxu0 %v4046_v36  ;;  %v193_v60 = vld [vmem:[#allocation2 + $0x20] sm:$0xff]  ;;  %v3542_v61 = vpop.f32.mrb[8].mxu0  ;;  %v469_v40 = vld [vmem:[#allocation2 + $0xa8] sm:$0xff] }
 0x10a   :  { %v3844_v62 = vpack.c.bf16 %v194_v59, %v193_v60  ;;  %732 = vst.msk [vmem:[#allocation2 + $0x108] sm:$0xff] %vm180_vm1, %v3542_v61  ;;  %v692_v63 = vpop.f32.mrb[9].mxu0  ;;  %v468_v39 = vld [vmem:[#allocation2 + $0xa0] sm:$0xff]  ;;  %v4047_v61 = vmov 0  }
 0x10b   :  { %731 = vst.msk [vmem:[#allocation2 + $0x100] sm:$0xff] %vm180_vm1, %v692_v63  ;;  %v4334_v42 = vpack.c.bf16 %v469_v40, %v468_v39  ;;  %4018 = vset.pattern.permute.xlu1 %v4047_v61  ;;  %4017 = vset.pattern.permute.xlu0 %v4047_v61  ;;  %v2521_v63 = vld [vmem:[%s5579_s4 + $0x10] sm:$0xff]  ;;  %v929_v61 = vld [vmem:[%s5575_s0 + $0x28] sm:$0xff] }
 0x10c   :  { %3845 = vmatprep.subr.bf16.mxu1 %v3844_v62  ;;  %3924 = vmatpush1.bf16.msra.mxu0 %v3844_v62  ;;  %v196_v2 = vld [vmem:[#allocation2 + $0x38] sm:$0xff]  ;;  %v2525_v39 = vld [vmem:[%s5579_s4 + $0x30] sm:$0xff] }
 0x10d   :  { %3847 = vmatpush3.bf16.msra.mxu1 %v3844_v62  ;;  %3925 = vmatprep.subr.bf16.mxu0 %v4046_v36  ;;  %v195_v4 = vld [vmem:[#allocation2 + $0x30] sm:$0xff]  ;;  %v3545_v6 = vpop.f32.mrb[10].mxu0  ;;  %v471_v45 = vld [vmem:[#allocation2 + $0xb8] sm:$0xff] }
 0x10e   :  { %v3848_v7 = vpack.c.bf16 %v196_v2, %v195_v4  ;;  %734 = vst.msk [vmem:[#allocation2 + $0x118] sm:$0xff] %vm180_vm1, %v3545_v6  ;;  %v702_v9 = vpop.f32.mrb[11].mxu0  ;;  %v470_v44 = vld [vmem:[#allocation2 + $0xb0] sm:$0xff]  ;;  %2595 = vperm.xlu1 %4018, %v2521_v63   ;;  %2585 = vperm.xlu0 %4017, %v2519_v0   ;;  %v2522_v4 = vld [vmem:[%s5579_s4 + $0x18] sm:$0xff]  ;;  %v2520_v6 = vld [vmem:[%s5579_s4 + $0x8] sm:$0xff] }
 0x10f   :  { %733 = vst.msk [vmem:[#allocation2 + $0x110] sm:$0xff] %vm180_vm1, %v702_v9  ;;  %v935_v63 = vld [vmem:[#allocation3 + $0x18] sm:$0xff] }
 0x110   :  { %3849 = vmatprep.subr.bf16.mxu1 %v3848_v7  ;;  %3927 = vmatpush1.bf16.msra.mxu0 %v3848_v7  ;;  %v943_v0 = vld [vmem:[#allocation3 + $0x58] sm:$0xff] }
 0x111   :  { %3851 = vmatpush3.bf16.msra.mxu1 %v3848_v7  ;;  %v3548_v13 = vpop.f32.mrb[12].mxu0  ;;  %3928 = vmatprep.subr.bf16.mxu0 %v4046_v36  ;;  %v740_v46 = vld [vmem:[#allocation2 + $0x108] sm:$0xff] }
 0x112   :  { %3869 = vmatprep.subr.bf16.mxu1 %v4318_v8  ;;  %736 = vst.msk [vmem:[#allocation2 + $0x128] sm:$0xff] %vm180_vm1, %v3548_v13  ;;  %v712_v38 = vpop.f32.mrb[13].mxu0  ;;  %2600 = vperm.xlu1 %4018, %v2522_v4  }
 0x113   :  { %735 = vst.msk [vmem:[#allocation2 + $0x120] sm:$0xff] %vm180_vm1, %v712_v38  ;;  %2590 = vperm.xlu0 %4017, %v2520_v6   ;;  %v2526_v38 = vld [vmem:[%s5579_s4 + $0x38] sm:$0xff]  ;;  %v2540_v6 = vld [vmem:[%s5579_s4 + $0xa8] sm:$0xff] }
 0x114   :  { %3457 = vmatmul.mubr.msk.f32.vlgmr.msra.gmra.mrb[8].mxu1 %vm50_vm0, %v4140_v14  ;;  %v4344_v14 = vpack.c.bf16 %v471_v45, %v470_v44 }
 0x115   :  { %3871 = vmatpush3.bf16.msra.mxu1 %v4318_v8  ;;  %3459 = vmatprep.mubr.msk.f32.mxu1 %vm50_vm0, %v4145_v15  ;;  %v3551_v41 = vpop.f32.mrb[14].mxu0  ;;  %v739_v15 = vld [vmem:[#allocation2 + $0x100] sm:$0xff]  ;;  %v742_v48 = vld [vmem:[#allocation2 + $0x118] sm:$0xff] }
 0x116   :  { %3873 = vmatprep.subr.bf16.mxu1 %v4324_v37  ;;  %738 = vst.msk [vmem:[#allocation2 + $0x138] sm:$0xff] %vm180_vm1, %v3551_v41  ;;  %v722_v43 = vpop.f32.mrb[15].mxu0  ;;  %v741_v47 = vld [vmem:[#allocation2 + $0x110] sm:$0xff]  ;;  %2610 = vperm.xlu1 %4018, %v2524_v11   ;;  %v2528_v41 = vld [vmem:[%s5579_s4 + $0x48] sm:$0xff] }
 0x117   :  { %737 = vst.msk [vmem:[#allocation2 + $0x130] sm:$0xff] %vm180_vm1, %v722_v43  ;;  %2605 = vperm.xlu0 %4017, %v2523_v12   ;;  %v2527_v43 = vld [vmem:[%s5579_s4 + $0x40] sm:$0xff]  ;;  %v938_v11 = vld [vmem:[#allocation3 + $0x30] sm:$0xff]  ;;  %v949_v12 = vld [vmem:[#allocation3 + $0x88] sm:$0xff] }
 0x118   :  { %3460 = vmatmul.mubr.msk.f32.gmra.mrb[10].mxu1 %vm50_vm0, %v4165_v18  ;;  %v3900_v18 = vpack.c.bf16 %v740_v46, %v739_v15 }
 0x119   :  { %3875 = vmatpush3.bf16.msra.mxu1 %v4324_v37  ;;  %3462 = vmatprep.mubr.msk.f32.mxu1 %vm50_vm0, %v4172_v19  ;;  %v3904_v19 = vpack.c.bf16 %v742_v48, %v741_v47  ;;  %v744_v49 = vld [vmem:[#allocation2 + $0x128] sm:$0xff] }
 0x11a   :  { %3877 = vmatprep.subr.bf16.mxu1 %v4334_v42  ;;  %2620 = vperm.xlu1 %4018, %v2526_v38  }
 0x11b   :  { %2615 = vperm.xlu0 %4017, %v2525_v39   ;;  %v2542_v39 = vld [vmem:[%s5579_s4 + $0xb8] sm:$0xff] }
 0x11c   :  { %3463 = vmatmul.mubr.msk.f32.gmra.mrb[12].mxu1 %vm50_vm0, %v4195_v22  ;;  %v743_v22 = vld [vmem:[#allocation2 + $0x120] sm:$0xff] }
 0x11d   :  { %3879 = vmatpush3.bf16.msra.mxu1 %v4334_v42  ;;  %3465 = vmatprep.mubr.msk.f32.mxu1 %vm50_vm0, %v4202_v23  ;;  %v3908_v23 = vpack.c.bf16 %v744_v49, %v743_v22  ;;  %v2529_v22 = vld [vmem:[%s5579_s4 + $0x50] sm:$0xff] }
 0x11e   :  { %3881 = vmatprep.subr.bf16.mxu1 %v4344_v14  ;;  %v745_v50 = vld [vmem:[#allocation2 + $0x130] sm:$0xff]  ;;  %2630 = vperm.xlu1 %4018, %v2528_v41   ;;  %v955_v41 = vld [vmem:[#allocation3 + $0xb8] sm:$0xff] }
 0x11f   :  { %2625 = vperm.xlu0 %4017, %v2527_v43   ;;  %v958_v43 = vld [vmem:[#allocation3 + $0xd0] sm:$0xff] }
 0x120   :  { %3466 = vmatmul.mubr.msk.f32.gmra.mrb[14].mxu1 %vm50_vm0, %v4224_v26  ;;  %v746_v26 = vld [vmem:[#allocation2 + $0x138] sm:$0xff] }
 0x121   :  { %3883 = vmatpush3.bf16.msra.mxu1 %v4344_v14  ;;  %3512 = vmatprep.mubr.msk.f32.mxu1 %vm50_vm0, %v4124_v10  ;;  %v3912_v10 = vpack.c.bf16 %v746_v26, %v745_v50 }
 0x122   :  { %3901 = vmatprep.subr.bf16.mxu1 %v3900_v18 }
 0x123   :  { %2635 = vperm.xlu0 %4017, %v2529_v22   ;;  %v967_v22 = vld [vmem:[#allocation3 + $0x118] sm:$0xff] }
 0x124   :  { %3513 = vmatmul.mubr.msk.f32.vlgmr.msra.gmra.mrb[16].mxu1 %vm50_vm0, %v4150_v16  ;;  %v933_v16 = vld [vmem:[#allocation3 + $0x8] sm:$0xff] }
 0x125   :  { %3903 = vmatpush3.bf16.msra.mxu1 %v3900_v18  ;;  %3515 = vmatprep.mubr.msk.f32.mxu1 %vm50_vm0, %v4156_v17  ;;  %v934_v17 = vld [vmem:[#allocation3 + $0x10] sm:$0xff] }
 0x126   :  { %3905 = vmatprep.subr.bf16.mxu1 %v3904_v19  ;;  %1236 = vmatprep.mubr.f32.mxu0 %v933_v16 }
 0x128   :  { %3516 = vmatmul.mubr.msk.f32.gmra.mrb[18].mxu1 %vm50_vm0, %v4180_v20 }
 0x129   :  { %3907 = vmatpush3.bf16.msra.mxu1 %v3904_v19  ;;  %3518 = vmatprep.mubr.msk.f32.mxu1 %vm50_vm0, %v4186_v21 }
 0x12a   :  { %3909 = vmatprep.subr.bf16.mxu1 %v3908_v23 }
 0x12c   :  { %3519 = vmatmul.mubr.msk.f32.gmra.mrb[20].mxu1 %vm50_vm0, %v4210_v24 }
 0x12d   :  { %3911 = vmatpush3.bf16.msra.mxu1 %v3908_v23  ;;  %3521 = vmatprep.mubr.msk.f32.mxu1 %vm50_vm0, %v4215_v25 }
 0x12e   :  { %3913 = vmatprep.subr.bf16.mxu1 %v3912_v10 }
 0x130   :  { %3522 = vmatmul.mubr.msk.f32.gmra.mrb[22].mxu1 %vm50_vm0, %v4233_v27 }
 0x131   :  { %3915 = vmatpush3.bf16.msra.mxu1 %v3912_v10  ;;  %3568 = vmatprep.mubr.msk.f32.mxu1 %vm50_vm0, %v4238_v28 }
 0x132   :  { %3965 = vmatprep.subr.bf16.mxu1 %v3900_v18 }
 0x134   :  { %3569 = vmatmul.mubr.msk.f32.vlgmr.msra.gmra.mrb[24].mxu1 %vm50_vm0, %v4250_v29 }
 0x135   :  { %3967 = vmatpush3.bf16.msra.mxu1 %v3900_v18  ;;  %3571 = vmatprep.mubr.msk.f32.mxu1 %vm50_vm0, %v4255_v30 }
 0x136   :  { %3969 = vmatprep.subr.bf16.mxu1 %v3904_v19 }
 0x138   :  { %3572 = vmatmul.mubr.msk.f32.gmra.mrb[26].mxu1 %vm50_vm0, %v4264_v31 }
 0x139   :  { %3971 = vmatpush3.bf16.msra.mxu1 %v3904_v19  ;;  %3574 = vmatprep.mubr.msk.f32.mxu1 %vm50_vm0, %v4269_v32  ;;  %v2530_v19 = vld [vmem:[%s5579_s4 + $0x58] sm:$0xff] }
 0x13a   :  { %3973 = vmatprep.subr.bf16.mxu1 %v3908_v23  ;;  %2640 = vperm.xlu1 %4018, %v2530_v19   ;;  %v947_v19 = vld [vmem:[#allocation3 + $0x78] sm:$0xff] }
 0x13c   :  { %3575 = vmatmul.mubr.msk.f32.gmra.mrb[28].mxu1 %vm50_vm0, %v4278_v33 }
 0x13d   :  { %3975 = vmatpush3.bf16.msra.mxu1 %v3908_v23  ;;  %3577 = vmatprep.mubr.msk.f32.mxu1 %vm50_vm0, %v4283_v34 }
 0x13e   :  { %3977 = vmatprep.subr.bf16.mxu1 %v3912_v10 }
 0x140   :  { %3578 = vmatmul.mubr.msk.f32.gmra.mrb[30].mxu1 %vm50_vm0, %v4292_v35 }
 0x141   :  { %3979 = vmatpush3.bf16.msra.mxu1 %v3912_v10  ;;  %3612 = vmatprep.mubr.f32.mxu1 %v934_v17 }
 0x1e7   :  { %v3458_v20 = vpop.f32.mrb[8].mxu1 }
 0x1e8   :  { %303 = vst.msk [vmem:[#allocation2 + $0x48] sm:$0xff] %vm180_vm1, %v3458_v20  ;;  %v263_v21 = vpop.f32.mrb[9].mxu1  ;;  %v2532_v20 = vld [vmem:[%s5579_s4 + $0x68] sm:$0xff] }
 0x1e9   :  { %302 = vst.msk [vmem:[#allocation2 + $0x40] sm:$0xff] %vm180_vm1, %v263_v21  ;;  %v2531_v21 = vld [vmem:[%s5579_s4 + $0x60] sm:$0xff]  ;;  %2650 = vperm.xlu1 %4018, %v2532_v20   ;;  %v2550_v20 = vld [vmem:[%s5579_s4 + $0xf8] sm:$0xff] }
 0x1ea   :  { %2645 = vperm.xlu0 %4017, %v2531_v21   ;;  %v2549_v21 = vld [vmem:[%s5579_s4 + $0xf0] sm:$0xff] }
 0x1eb   :  { %v3461_v24 = vpop.f32.mrb[10].mxu1 }
 0x1ec   :  { %305 = vst.msk [vmem:[#allocation2 + $0x58] sm:$0xff] %vm180_vm1, %v3461_v24  ;;  %v273_v25 = vpop.f32.mrb[11].mxu1 }
 0x1ed   :  { %304 = vst.msk [vmem:[#allocation2 + $0x50] sm:$0xff] %vm180_vm1, %v273_v25 }
 0x1ef   :  { %v3464_v27 = vpop.f32.mrb[12].mxu1  ;;  %v1133_v28 = vld [vmem:[#allocation2 + $0x48] sm:$0xff] }
 0x1f0   :  { %307 = vst.msk [vmem:[#allocation2 + $0x68] sm:$0xff] %vm180_vm1, %v3464_v27  ;;  %v283_v29 = vpop.f32.mrb[13].mxu1  ;;  %v1132_v30 = vld [vmem:[#allocation2 + $0x40] sm:$0xff] }
 0x1f1   :  { %306 = vst.msk [vmem:[#allocation2 + $0x60] sm:$0xff] %vm180_vm1, %v283_v29  ;;  %v3929_v31 = vpack.c.bf16 %v1133_v28, %v1132_v30 }
 0x1f3   :  { %v3467_v32 = vpop.f32.mrb[14].mxu1  ;;  %3930 = vmatpush1.bf16.msra.mxu0 %v3929_v31  ;;  %v1135_v33 = vld [vmem:[#allocation2 + $0x58] sm:$0xff] }
 0x1f4   :  { %309 = vst.msk [vmem:[#allocation2 + $0x78] sm:$0xff] %vm180_vm1, %v3467_v32  ;;  %v293_v34 = vpop.f32.mrb[15].mxu1  ;;  %3931 = vmatprep.subr.bf16.mxu0 %v4046_v36  ;;  %v1134_v35 = vld [vmem:[#allocation2 + $0x50] sm:$0xff]  ;;  %v2534_v31 = vld [vmem:[%s5579_s4 + $0x78] sm:$0xff] }
 0x1f5   :  { %308 = vst.msk [vmem:[#allocation2 + $0x70] sm:$0xff] %vm180_vm1, %v293_v34  ;;  %v3932_v51 = vpack.c.bf16 %v1135_v33, %v1134_v35  ;;  %v2533_v32 = vld [vmem:[%s5579_s4 + $0x70] sm:$0xff]  ;;  %2660 = vperm.xlu1 %4018, %v2534_v31   ;;  %v956_v31 = vld [vmem:[#allocation3 + $0xc0] sm:$0xff] }
 0x1f6   :  { %2655 = vperm.xlu0 %4017, %v2533_v32   ;;  %v985_v32 = vld [vmem:[#allocation3 + $0x1a8] sm:$0xff] }
 0x1f7   :  { %v3514_v52 = vpop.f32.mrb[16].mxu1  ;;  %3933 = vmatpush1.bf16.msra.mxu0 %v3932_v51  ;;  %v1137_v53 = vld [vmem:[#allocation2 + $0x68] sm:$0xff] }
 0x1f8   :  { %578 = vst.msk [vmem:[#allocation2 + $0xc8] sm:$0xff] %vm180_vm1, %v3514_v52  ;;  %v538_v54 = vpop.f32.mrb[17].mxu1  ;;  %3934 = vmatprep.subr.bf16.mxu0 %v4046_v36  ;;  %v1136_v55 = vld [vmem:[#allocation2 + $0x60] sm:$0xff] }
 0x1f9   :  { %577 = vst.msk [vmem:[#allocation2 + $0xc0] sm:$0xff] %vm180_vm1, %v538_v54  ;;  %v3935_v56 = vpack.c.bf16 %v1137_v53, %v1136_v55  ;;  %v2536_v54 = vld [vmem:[%s5579_s4 + $0x88] sm:$0xff]  ;;  %v2535_v55 = vld [vmem:[%s5579_s4 + $0x80] sm:$0xff] }
 0x1fa   :  { %2670 = vperm.xlu1 %4018, %v2536_v54   ;;  %2665 = vperm.xlu0 %4017, %v2535_v55   ;;  %v963_v54 = vld [vmem:[#allocation3 + $0xf8] sm:$0xff]  ;;  %v994_v55 = vld [vmem:[#allocation3 + $0x1f0] sm:$0xff] }
 0x1fb   :  { %v3517_v57 = vpop.f32.mrb[18].mxu1  ;;  %3936 = vmatpush1.bf16.msra.mxu0 %v3935_v56  ;;  %v1139_v58 = vld [vmem:[#allocation2 + $0x78] sm:$0xff]  ;;  %v932_v56 = vld [vmem:[#allocation3] sm:$0xff] }
 0x1fc   :  { %580 = vst.msk [vmem:[#allocation2 + $0xd8] sm:$0xff] %vm180_vm1, %v3517_v57  ;;  %v548_v59 = vpop.f32.mrb[19].mxu1  ;;  %3937 = vmatprep.subr.bf16.mxu0 %v4046_v36  ;;  %v1138_v60 = vld [vmem:[#allocation2 + $0x70] sm:$0xff]  ;;  %v937_v57 = vld [vmem:[#allocation3 + $0x28] sm:$0xff] }
 0x1fd   :  { %579 = vst.msk [vmem:[#allocation2 + $0xd0] sm:$0xff] %vm180_vm1, %v548_v59  ;;  %v3938_v62 = vpack.c.bf16 %v1139_v58, %v1138_v60  ;;  %v936_v58 = vld [vmem:[#allocation3 + $0x20] sm:$0xff]  ;;  %v2538_v59 = vld [vmem:[%s5579_s4 + $0x98] sm:$0xff] }
 0x1fe   :  { %v928_v60 = vld [vmem:[%s5575_s0 + $0x20] sm:$0xff]  ;;  %2680 = vperm.xlu1 %4018, %v2538_v59   ;;  %v966_v59 = vld [vmem:[#allocation3 + $0x110] sm:$0xff] }
 0x1ff   :  { %v3520_v1 = vpop.f32.mrb[20].mxu1  ;;  %3939 = vmatpush1.bf16.msra.mxu0 %v3938_v62  ;;  %v1149_v45 = vld [vmem:[#allocation2 + $0xc8] sm:$0xff]  ;;  %v2537_v62 = vld [vmem:[%s5579_s4 + $0x90] sm:$0xff]  ;;  %v4004_v4 = vpack.c.bf16 %v929_v61, %v928_v60  ;;  %v1000_v60 = vld [vmem:[#allocation3 + $0x220] sm:$0xff] }
 0x200   :  { %582 = vst.msk [vmem:[#allocation2 + $0xe8] sm:$0xff] %vm180_vm1, %v3520_v1  ;;  %v558_v2 = vpop.f32.mrb[21].mxu1  ;;  %3940 = vmatprep.subr.bf16.mxu0 %v4046_v36  ;;  %v1148_v44 = vld [vmem:[#allocation2 + $0xc0] sm:$0xff]  ;;  %v939_v1 = vld [vmem:[#allocation3 + $0x38] sm:$0xff]  ;;  %2675 = vperm.xlu0 %4017, %v2537_v62   ;;  %v2557_v62 = vld [vmem:[%s5579_s4 + $0x130] sm:$0xff] }
 0x201   :  { %581 = vst.msk [vmem:[#allocation2 + $0xe0] sm:$0xff] %vm180_vm1, %v558_v2  ;;  %v3953_v47 = vpack.c.bf16 %v1149_v45, %v1148_v44  ;;  %v946_v2 = vld [vmem:[#allocation3 + $0x70] sm:$0xff]  ;;  %v2544_v44 = vld [vmem:[%s5579_s4 + $0xc8] sm:$0xff]  ;;  %v2543_v45 = vld [vmem:[%s5579_s4 + $0xc0] sm:$0xff] }
 0x202   :  { %2690 = vperm.xlu1 %4018, %v2540_v6   ;;  %v2558_v61 = vld [vmem:[%s5579_s4 + $0x138] sm:$0xff]  ;;  %v2559_v6 = vld [vmem:[%s5579_s4 + $0x140] sm:$0xff] }
 0x203   :  { %v3523_v7 = vpop.f32.mrb[22].mxu1  ;;  %3942 = vmatpush1.bf16.msra.mxu0 %v4318_v8  ;;  %v1151_v49 = vld [vmem:[#allocation2 + $0xd8] sm:$0xff] }
 0x204   :  { %584 = vst.msk [vmem:[#allocation2 + $0xf8] sm:$0xff] %vm180_vm1, %v3523_v7  ;;  %v568_v9 = vpop.f32.mrb[23].mxu1  ;;  %3943 = vmatprep.subr.bf16.mxu0 %v4046_v36  ;;  %v930_v7 = vld [vmem:[%s5575_s0 + $0x30] sm:$0xff] }
 0x205   :  { %583 = vst.msk [vmem:[#allocation2 + $0xf0] sm:$0xff] %vm180_vm1, %v568_v9  ;;  %v2539_v9 = vld [vmem:[%s5579_s4 + $0xa0] sm:$0xff] }
 0x206   :  { %2685 = vperm.xlu0 %4017, %v2539_v9   ;;  %2700 = vperm.xlu1 %4018, %v2542_v39   ;;  %v972_v9 = vld [vmem:[#allocation3 + $0x140] sm:$0xff]  ;;  %v975_v39 = vld [vmem:[#allocation3 + $0x158] sm:$0xff] }
 0x207   :  { %v3570_v13 = vpop.f32.mrb[24].mxu1  ;;  %3945 = vmatpush1.bf16.msra.mxu0 %v4324_v37  ;;  %v1153_v25 = vld [vmem:[#allocation2 + $0xe8] sm:$0xff] }
 0x208   :  { %853 = vst.msk [vmem:[#allocation2 + $0x148] sm:$0xff] %vm180_vm1, %v3570_v13  ;;  %v813_v8 = vpop.f32.mrb[25].mxu1  ;;  %3946 = vmatprep.subr.bf16.mxu0 %v4046_v36  ;;  %v1152_v24 = vld [vmem:[#allocation2 + $0xe0] sm:$0xff]  ;;  %v942_v13 = vld [vmem:[#allocation3 + $0x50] sm:$0xff] }
 0x209   :  { %852 = vst.msk [vmem:[#allocation2 + $0x140] sm:$0xff] %vm180_vm1, %v813_v8  ;;  %v3959_v29 = vpack.c.bf16 %v1153_v25, %v1152_v24  ;;  %v952_v8 = vld [vmem:[#allocation3 + $0xa0] sm:$0xff]  ;;  %v953_v24 = vld [vmem:[#allocation3 + $0xa8] sm:$0xff]  ;;  %v979_v25 = vld [vmem:[#allocation3 + $0x178] sm:$0xff] }
 0x20a   :  { %2710 = vperm.xlu1 %4018, %v2544_v44   ;;  %v978_v44 = vld [vmem:[#allocation3 + $0x170] sm:$0xff] }
 0x20b   :  { %v3573_v40 = vpop.f32.mrb[26].mxu1  ;;  %3948 = vmatpush1.bf16.msra.mxu0 %v4334_v42  ;;  %v1155_v34 = vld [vmem:[#allocation2 + $0xf8] sm:$0xff] }
 0x20c   :  { %855 = vst.msk [vmem:[#allocation2 + $0x158] sm:$0xff] %vm180_vm1, %v3573_v40  ;;  %v823_v37 = vpop.f32.mrb[27].mxu1  ;;  %3949 = vmatprep.subr.bf16.mxu0 %v4046_v36  ;;  %v1154_v33 = vld [vmem:[#allocation2 + $0xf0] sm:$0xff] }
 0x20d   :  { %854 = vst.msk [vmem:[#allocation2 + $0x150] sm:$0xff] %vm180_vm1, %v823_v37  ;;  %v3962_v52 = vpack.c.bf16 %v1155_v34, %v1154_v33  ;;  %v2541_v40 = vld [vmem:[%s5579_s4 + $0xb0] sm:$0xff]  ;;  %v941_v37 = vld [vmem:[#allocation3 + $0x48] sm:$0xff]  ;;  %v960_v33 = vld [vmem:[#allocation3 + $0xe0] sm:$0xff] }
 0x20e   :  { %2695 = vperm.xlu0 %4017, %v2541_v40   ;;  %v988_v34 = vld [vmem:[#allocation3 + $0x1c0] sm:$0xff]  ;;  %v1018_v40 = vld [vmem:[#allocation3 + $0x2b0] sm:$0xff] }
 0x20f   :  { %v3576_v42 = vpop.f32.mrb[28].mxu1  ;;  %3951 = vmatpush1.bf16.msra.mxu0 %v4344_v14  ;;  %v1165_v15 = vld [vmem:[#allocation2 + $0x148] sm:$0xff]  ;;  %v1150_v14 = vld [vmem:[#allocation2 + $0xd0] sm:$0xff] }
 0x210   :  { %857 = vst.msk [vmem:[#allocation2 + $0x168] sm:$0xff] %vm180_vm1, %v3576_v42  ;;  %v833_v46 = vpop.f32.mrb[29].mxu1  ;;  %3952 = vmatprep.subr.bf16.mxu0 %v4046_v36  ;;  %v1164_v18 = vld [vmem:[#allocation2 + $0x140] sm:$0xff]  ;;  %v3956_v16 = vpack.c.bf16 %v1151_v49, %v1150_v14  ;;  %v951_v14 = vld [vmem:[#allocation3 + $0x98] sm:$0xff]  ;;  %v970_v49 = vld [vmem:[#allocation3 + $0x130] sm:$0xff] }
 0x211   :  { %856 = vst.msk [vmem:[#allocation2 + $0x160] sm:$0xff] %vm180_vm1, %v833_v46  ;;  %v3980_v48 = vpack.c.bf16 %v1165_v15, %v1164_v18  ;;  %v944_v42 = vld [vmem:[#allocation3 + $0x60] sm:$0xff]  ;;  %v961_v15 = vld [vmem:[#allocation3 + $0xe8] sm:$0xff] }
 0x212   :  { %v948_v46 = vld [vmem:[#allocation3 + $0x80] sm:$0xff]  ;;  %2705 = vperm.xlu0 %4017, %v2543_v45  }
 0x213   :  { %v3579_v23 = vpop.f32.mrb[30].mxu1  ;;  %3954 = vmatpush1.bf16.msra.mxu0 %v3953_v47  ;;  %3981 = vmatprep.subr.bf16.mxu1 %v3980_v48  ;;  %v1167_v50 = vld [vmem:[#allocation2 + $0x158] sm:$0xff]  ;;  %v964_v18 = vld [vmem:[#allocation3 + $0x100] sm:$0xff] }
 0x214   :  { %859 = vst.msk [vmem:[#allocation2 + $0x178] sm:$0xff] %vm180_vm1, %v3579_v23  ;;  %v843_v26 = vpop.f32.mrb[31].mxu1  ;;  %3983 = vmatpush3.bf16.msra.mxu1 %v3980_v48  ;;  %3955 = vmatprep.subr.bf16.mxu0 %v4046_v36  ;;  %v1166_v10 = vld [vmem:[#allocation2 + $0x150] sm:$0xff]  ;;  %v2546_v47 = vld [vmem:[%s5579_s4 + $0xd8] sm:$0xff]  ;;  %v2548_v23 = vld [vmem:[%s5579_s4 + $0xe8] sm:$0xff] }
 0x215   :  { %858 = vst.msk [vmem:[#allocation2 + $0x170] sm:$0xff] %vm180_vm1, %v843_v26  ;;  %v3984_v17 = vpack.c.bf16 %v1167_v50, %v1166_v10  ;;  %2720 = vperm.xlu1 %4018, %v2546_v47   ;;  %v2545_v48 = vld [vmem:[%s5579_s4 + $0xd0] sm:$0xff]  ;;  %v2547_v50 = vld [vmem:[%s5579_s4 + $0xe0] sm:$0xff]  ;;  %v973_v10 = vld [vmem:[#allocation3 + $0x148] sm:$0xff] }
 0x216   :  { %2715 = vperm.xlu0 %4017, %v2545_v48   ;;  %v950_v26 = vld [vmem:[#allocation3 + $0x90] sm:$0xff]  ;;  %v1024_v45 = vld [vmem:[#allocation3 + $0x2e0] sm:$0xff]  ;;  %v981_v47 = vld [vmem:[#allocation3 + $0x188] sm:$0xff] }
 0x217   :  { %3957 = vmatpush1.bf16.msra.mxu0 %v3956_v16  ;;  %3985 = vmatprep.subr.bf16.mxu1 %v3984_v17  ;;  %v1169_v27 = vld [vmem:[#allocation2 + $0x168] sm:$0xff]  ;;  %v954_v16 = vld [vmem:[#allocation3 + $0xb0] sm:$0xff] }
 0x218   :  { %3987 = vmatpush3.bf16.msra.mxu1 %v3984_v17  ;;  %3958 = vmatprep.subr.bf16.mxu0 %v4046_v36  ;;  %v1168_v28 = vld [vmem:[#allocation2 + $0x160] sm:$0xff]  ;;  %v1030_v48 = vld [vmem:[#allocation3 + $0x310] sm:$0xff] }
 0x219   :  { %v3988_v30 = vpack.c.bf16 %v1169_v27, %v1168_v28  ;;  %2730 = vperm.xlu1 %4018, %v2548_v23   ;;  %v976_v17 = vld [vmem:[#allocation3 + $0x160] sm:$0xff]  ;;  %v957_v27 = vld [vmem:[#allocation3 + $0xc8] sm:$0xff]  ;;  %v982_v28 = vld [vmem:[#allocation3 + $0x190] sm:$0xff] }
 0x21a   :  { %2725 = vperm.xlu0 %4017, %v2547_v50   ;;  %v984_v23 = vld [vmem:[#allocation3 + $0x1a0] sm:$0xff] }
 0x21b   :  { %3960 = vmatpush1.bf16.msra.mxu0 %v3959_v29  ;;  %3989 = vmatprep.subr.bf16.mxu1 %v3988_v30  ;;  %v1171_v35 = vld [vmem:[#allocation2 + $0x178] sm:$0xff]  ;;  %v2552_v29 = vld [vmem:[%s5579_s4 + $0x108] sm:$0xff]  ;;  %v1036_v50 = vld [vmem:[#allocation3 + $0x340] sm:$0xff] }
 0x21c   :  { %3991 = vmatpush3.bf16.msra.mxu1 %v3988_v30  ;;  %3961 = vmatprep.subr.bf16.mxu0 %v4046_v36  ;;  %v1170_v51 = vld [vmem:[#allocation2 + $0x170] sm:$0xff]  ;;  %v940_v36 = vld [vmem:[#allocation3 + $0x40] sm:$0xff] }
 0x21d   :  { %v3992_v53 = vpack.c.bf16 %v1171_v35, %v1170_v51  ;;  %2740 = vperm.xlu1 %4018, %v2550_v20   ;;  %v2551_v30 = vld [vmem:[%s5579_s4 + $0x100] sm:$0xff]  ;;  %v2554_v35 = vld [vmem:[%s5579_s4 + $0x118] sm:$0xff]  ;;  %v2553_v51 = vld [vmem:[%s5579_s4 + $0x110] sm:$0xff] }
 0x21e   :  { %2735 = vperm.xlu0 %4017, %v2549_v21   ;;  %v987_v20 = vld [vmem:[#allocation3 + $0x1b8] sm:$0xff]  ;;  %v1042_v21 = vld [vmem:[#allocation3 + $0x370] sm:$0xff] }
 0x21f   :  { %3963 = vmatpush1.bf16.msra.mxu0 %v3962_v52  ;;  %3993 = vmatprep.subr.bf16.mxu1 %v3992_v53  ;;  %v959_v52 = vld [vmem:[#allocation3 + $0xd8] sm:$0xff] }
 0x220   :  { %3995 = vmatpush3.bf16.msra.mxu1 %v3992_v53  ;;  %v991_v53 = vld [vmem:[#allocation3 + $0x1d8] sm:$0xff] }
 0x221   :  { %3997 = vmatprep.subr.bf16.mxu1 %v4099_v3  ;;  %2750 = vperm.xlu1 %4018, %v2552_v29   ;;  %v990_v29 = vld [vmem:[#allocation3 + $0x1d0] sm:$0xff] }
 0x222   :  { %1237 = vmatmul.mubr.f32.vlgmr.msra.gmra.mrb[16].mxu0 %v932_v56  ;;  %2745 = vperm.xlu0 %4017, %v2551_v30   ;;  %v2556_v56 = vld [vmem:[%s5579_s4 + $0x128] sm:$0xff]  ;;  %v1048_v30 = vld [vmem:[#allocation3 + $0x3a0] sm:$0xff] }
 0x223   :  { %3613 = vmatmul.mubr.f32.vlgmr.msra.gmra.mrb[32].mxu1 %v937_v57  ;;  %1241 = vmatprep.mubr.f32.mxu0 %v936_v58  ;;  %v2555_v57 = vld [vmem:[%s5579_s4 + $0x120] sm:$0xff]  ;;  %v962_v58 = vld [vmem:[#allocation3 + $0xf0] sm:$0xff] }
 0x224   :  { %3999 = vmatpush3.bf16.msra.mxu1 %v4099_v3  ;;  %3615 = vmatprep.mubr.f32.mxu1 %v940_v36  ;;  %v931_v3 = vld [vmem:[%s5575_s0 + $0x38] sm:$0xff]  ;;  %v997_v36 = vld [vmem:[#allocation3 + $0x208] sm:$0xff] }
 0x225   :  { %4001 = vmatprep.subr.bf16.mxu1 %v4104_v5  ;;  %v4008_v38 = vpack.c.bf16 %v931_v3, %v930_v7  ;;  %2760 = vperm.xlu1 %4018, %v2554_v35   ;;  %v968_v7 = vld [vmem:[#allocation3 + $0x120] sm:$0xff]  ;;  %v1009_v3 = vld [vmem:[#allocation3 + $0x268] sm:$0xff] }
 0x226   :  { %1242 = vmatmul.mubr.f32.gmra.mrb[18].mxu0 %v935_v63  ;;  %2755 = vperm.xlu0 %4017, %v2553_v51   ;;  %v965_v63 = vld [vmem:[#allocation3 + $0x108] sm:$0xff]  ;;  %v1054_v51 = vld [vmem:[#allocation3 + $0x3d0] sm:$0xff] }
 0x227   :  { %3616 = vmatmul.mubr.f32.gmra.mrb[34].mxu1 %v943_v0  ;;  %1246 = vmatprep.mubr.f32.mxu0 %v939_v1  ;;  %v1003_v0 = vld [vmem:[#allocation3 + $0x238] sm:$0xff]  ;;  %v969_v1 = vld [vmem:[#allocation3 + $0x128] sm:$0xff] }
 0x228   :  { %3618 = vmatprep.mubr.f32.mxu1 %v946_v2  ;;  %4003 = vmatpush3.bf16.msra.mxu1 %v4104_v5  ;;  %v945_v5 = vld [vmem:[#allocation3 + $0x68] sm:$0xff]  ;;  %v1006_v2 = vld [vmem:[#allocation3 + $0x250] sm:$0xff] }
 0x229   :  { %4005 = vmatprep.subr.bf16.mxu1 %v4004_v4  ;;  %2770 = vperm.xlu1 %4018, %v2556_v56   ;;  %v993_v35 = vld [vmem:[#allocation3 + $0x1e8] sm:$0xff]  ;;  %v996_v56 = vld [vmem:[#allocation3 + $0x200] sm:$0xff] }
 0x22a   :  { %1247 = vmatmul.mubr.f32.gmra.mrb[20].mxu0 %v938_v11  ;;  %2765 = vperm.xlu0 %4017, %v2555_v57   ;;  %v1012_v11 = vld [vmem:[#allocation3 + $0x280] sm:$0xff] }
 0x22b   :  { %3619 = vmatmul.mubr.f32.gmra.mrb[36].mxu1 %v949_v12  ;;  %1251 = vmatprep.mubr.f32.mxu0 %v942_v13  ;;  %v2562_v12 = vld [vmem:[%s5579_s4 + $0x158] sm:$0xff]  ;;  %v2561_v13 = vld [vmem:[%s5579_s4 + $0x150] sm:$0xff]  ;;  %v1060_v57 = vld [vmem:[#allocation3 + $0x400] sm:$0xff] }
 0x22c   :  { %3621 = vmatprep.mubr.f32.mxu1 %v952_v8  ;;  %4007 = vmatpush3.bf16.msra.mxu1 %v4004_v4  ;;  %v2560_v4 = vld [vmem:[%s5579_s4 + $0x148] sm:$0xff]  ;;  %v971_v8 = vld [vmem:[#allocation3 + $0x138] sm:$0xff] }
 0x22d   :  { %4009 = vmatprep.subr.bf16.mxu1 %v4008_v38  ;;  %2780 = vperm.xlu1 %4018, %v2558_v61   ;;  %v999_v61 = vld [vmem:[#allocation3 + $0x218] sm:$0xff] }
 0x22e   :  { %1252 = vmatmul.mubr.f32.gmra.mrb[22].mxu0 %v941_v37  ;;  %2775 = vperm.xlu0 %4017, %v2557_v62   ;;  %v2564_v37 = vld [vmem:[%s5579_s4 + $0x168] sm:$0xff]  ;;  %v1066_v62 = vld [vmem:[#allocation3 + $0x430] sm:$0xff] }
 0x22f   :  { %3622 = vmatmul.mubr.f32.gmra.mrb[38].mxu1 %v955_v41  ;;  %1256 = vmatprep.mubr.f32.mxu0 %v945_v5  ;;  %v2563_v41 = vld [vmem:[%s5579_s4 + $0x160] sm:$0xff]  ;;  %v974_v5 = vld [vmem:[#allocation3 + $0x150] sm:$0xff] }
 0x230   :  { %3624 = vmatprep.mubr.f32.mxu1 %v958_v43  ;;  %4011 = vmatpush3.bf16.msra.mxu1 %v4008_v38  ;;  %v1015_v38 = vld [vmem:[#allocation3 + $0x298] sm:$0xff]  ;;  %v1021_v43 = vld [vmem:[#allocation3 + $0x2c8] sm:$0xff] }
 0x231   :  { %2790 = vperm.xlu1 %4018, %v2560_v4   ;;  %v1002_v4 = vld [vmem:[#allocation3 + $0x230] sm:$0xff] }
 0x232   :  { %1257 = vmatmul.mubr.f32.gmra.mrb[24].mxu0 %v944_v42  ;;  %2785 = vperm.xlu0 %4017, %v2559_v6   ;;  %v2566_v42 = vld [vmem:[%s5579_s4 + $0x178] sm:$0xff]  ;;  %v1072_v6 = vld [vmem:[#allocation3 + $0x460] sm:$0xff] }
 0x233   :  { %3625 = vmatmul.mubr.f32.gmra.mrb[40].mxu1 %v961_v15  ;;  %1261 = vmatprep.mubr.f32.mxu0 %v948_v46  ;;  %v2565_v15 = vld [vmem:[%s5579_s4 + $0x170] sm:$0xff]  ;;  %v977_v46 = vld [vmem:[#allocation3 + $0x168] sm:$0xff] }
 0x234   :  { %3627 = vmatprep.mubr.f32.mxu1 %v964_v18  ;;  %v1027_v18 = vld [vmem:[#allocation3 + $0x2f8] sm:$0xff] }
 0x235   :  { %2800 = vperm.xlu1 %4018, %v2562_v12   ;;  %v1005_v12 = vld [vmem:[#allocation3 + $0x248] sm:$0xff] }
 0x236   :  { %1262 = vmatmul.mubr.f32.gmra.mrb[26].mxu0 %v947_v19  ;;  %2795 = vperm.xlu0 %4017, %v2561_v13   ;;  %v2568_v19 = vld [vmem:[%s5579_s4 + $0x188] sm:$0xff]  ;;  %v1078_v13 = vld [vmem:[#allocation3 + $0x490] sm:$0xff] }
 0x237   :  { %3628 = vmatmul.mubr.f32.gmra.mrb[42].mxu1 %v967_v22  ;;  %1266 = vmatprep.mubr.f32.mxu0 %v951_v14  ;;  %v2567_v22 = vld [vmem:[%s5579_s4 + $0x180] sm:$0xff] }
 0x238   :  { %3630 = vmatprep.mubr.f32.mxu1 %v970_v49  ;;  %v980_v14 = vld [vmem:[#allocation3 + $0x180] sm:$0xff]  ;;  %v1033_v49 = vld [vmem:[#allocation3 + $0x328] sm:$0xff] }
 0x239   :  { %2810 = vperm.xlu1 %4018, %v2564_v37   ;;  %v1007_v37 = vld [vmem:[#allocation3 + $0x258] sm:$0xff] }
 0x23a   :  { %1267 = vmatmul.mubr.f32.gmra.mrb[28].mxu0 %v950_v26  ;;  %2805 = vperm.xlu0 %4017, %v2563_v41   ;;  %v2570_v26 = vld [vmem:[%s5579_s4 + $0x198] sm:$0xff] }
 0x23b   :  { %3631 = vmatmul.mubr.f32.gmra.mrb[44].mxu1 %v973_v10  ;;  %1271 = vmatprep.mubr.f32.mxu0 %v954_v16  ;;  %v2569_v10 = vld [vmem:[%s5579_s4 + $0x190] sm:$0xff]  ;;  %v983_v16 = vld [vmem:[#allocation3 + $0x198] sm:$0xff] }
 0x23c   :  { %3633 = vmatprep.mubr.f32.mxu1 %v976_v17  ;;  %v1039_v17 = vld [vmem:[#allocation3 + $0x358] sm:$0xff] }
 0x23d   :  { %2820 = vperm.xlu1 %4018, %v2566_v42   ;;  %v1087_v41 = vld [vmem:[#allocation3 + $0x4d8] sm:$0xff]  ;;  %v1014_v42 = vld [vmem:[#allocation3 + $0x290] sm:$0xff] }
 0x23e   :  { %1272 = vmatmul.mubr.f32.gmra.mrb[30].mxu0 %v953_v24  ;;  %2815 = vperm.xlu0 %4017, %v2565_v15   ;;  %v2572_v24 = vld [vmem:[%s5579_s4 + $0x1a8] sm:$0xff]  ;;  %v1096_v15 = vld [vmem:[#allocation3 + $0x520] sm:$0xff] }
 0x23f   :  { %3634 = vmatmul.mubr.f32.gmra.mrb[46].mxu1 %v979_v25  ;;  %1276 = vmatprep.mubr.f32.mxu0 %v957_v27  ;;  %v2571_v25 = vld [vmem:[%s5579_s4 + $0x1a0] sm:$0xff]  ;;  %v986_v27 = vld [vmem:[#allocation3 + $0x1b0] sm:$0xff] }
 0x240   :  { %3636 = vmatprep.mubr.f32.mxu1 %v982_v28  ;;  %v1045_v28 = vld [vmem:[#allocation3 + $0x388] sm:$0xff] }
 0x241   :  { %2830 = vperm.xlu1 %4018, %v2568_v19   ;;  %v1016_v19 = vld [vmem:[#allocation3 + $0x2a0] sm:$0xff] }
 0x242   :  { %1277 = vmatmul.mubr.f32.gmra.mrb[32].mxu0 %v956_v31  ;;  %2825 = vperm.xlu0 %4017, %v2567_v22   ;;  %v2574_v31 = vld [vmem:[%s5579_s4 + $0x1b8] sm:$0xff]  ;;  %v1105_v22 = vld [vmem:[#allocation3 + $0x568] sm:$0xff] }
 0x243   :  { %3637 = vmatmul.mubr.f32.gmra.mrb[48].mxu1 %v985_v32  ;;  %1281 = vmatprep.mubr.f32.mxu0 %v960_v33  ;;  %v2573_v32 = vld [vmem:[%s5579_s4 + $0x1b0] sm:$0xff]  ;;  %v989_v33 = vld [vmem:[#allocation3 + $0x1c8] sm:$0xff] }
 0x244   :  { %3639 = vmatprep.mubr.f32.mxu1 %v988_v34  ;;  %v1051_v34 = vld [vmem:[#allocation3 + $0x3b8] sm:$0xff] }
 0x245   :  { %2840 = vperm.xlu1 %4018, %v2570_v26   ;;  %v1023_v26 = vld [vmem:[#allocation3 + $0x2d8] sm:$0xff] }
 0x246   :  { %1282 = vmatmul.mubr.f32.gmra.mrb[34].mxu0 %v959_v52  ;;  %2835 = vperm.xlu0 %4017, %v2569_v10   ;;  %v2576_v52 = vld [vmem:[%s5579_s4 + $0x1c8] sm:$0xff]  ;;  %v1114_v10 = vld [vmem:[#allocation3 + $0x5b0] sm:$0xff] }
 0x247   :  { %3640 = vmatmul.mubr.f32.gmra.mrb[50].mxu1 %v991_v53  ;;  %1286 = vmatprep.mubr.f32.mxu0 %v963_v54  ;;  %v2575_v53 = vld [vmem:[%s5579_s4 + $0x1c0] sm:$0xff] }
 0x248   :  { %3642 = vmatprep.mubr.f32.mxu1 %v994_v55  ;;  %v992_v54 = vld [vmem:[#allocation3 + $0x1e0] sm:$0xff]  ;;  %v1057_v55 = vld [vmem:[#allocation3 + $0x3e8] sm:$0xff] }
 0x249   :  { %2850 = vperm.xlu1 %4018, %v2572_v24   ;;  %v1025_v24 = vld [vmem:[#allocation3 + $0x2e8] sm:$0xff] }
 0x24a   :  { %1287 = vmatmul.mubr.f32.gmra.mrb[36].mxu0 %v962_v58  ;;  %2845 = vperm.xlu0 %4017, %v2571_v25   ;;  %v2578_v58 = vld [vmem:[%s5579_s4 + $0x1d8] sm:$0xff] }
 0x24b   :  { %3643 = vmatmul.mubr.f32.gmra.mrb[52].mxu1 %v997_v36  ;;  %1291 = vmatprep.mubr.f32.mxu0 %v966_v59  ;;  %v2577_v36 = vld [vmem:[%s5579_s4 + $0x1d0] sm:$0xff]  ;;  %v995_v59 = vld [vmem:[#allocation3 + $0x1f8] sm:$0xff] }
 0x24c   :  { %3645 = vmatprep.mubr.f32.mxu1 %v1000_v60  ;;  %v1063_v60 = vld [vmem:[#allocation3 + $0x418] sm:$0xff] }
 0x24d   :  { %2860 = vperm.xlu1 %4018, %v2574_v31   ;;  %v1123_v25 = vld [vmem:[#allocation3 + $0x5f8] sm:$0xff]  ;;  %v1032_v31 = vld [vmem:[#allocation3 + $0x320] sm:$0xff] }
 0x24e   :  { %1292 = vmatmul.mubr.f32.gmra.mrb[38].mxu0 %v965_v63  ;;  %2855 = vperm.xlu0 %4017, %v2573_v32   ;;  %v2580_v63 = vld [vmem:[%s5579_s4 + $0x1e8] sm:$0xff]  ;;  %v862_v32 = vld [vmem:[%s5577_s2 + $0x10] sm:$0xff] }
 0x24f   :  { %3646 = vmatmul.mubr.f32.gmra.mrb[54].mxu1 %v1003_v0  ;;  %1296 = vmatprep.mubr.f32.mxu0 %v969_v1  ;;  %v2579_v0 = vld [vmem:[%s5579_s4 + $0x1e0] sm:$0xff]  ;;  %v998_v1 = vld [vmem:[#allocation3 + $0x210] sm:$0xff] }
 0x250   :  { %3648 = vmatprep.mubr.f32.mxu1 %v1006_v2  ;;  %v1069_v2 = vld [vmem:[#allocation3 + $0x448] sm:$0xff] }
 0x251   :  { %2870 = vperm.xlu1 %4018, %v2576_v52   ;;  %v1034_v52 = vld [vmem:[#allocation3 + $0x330] sm:$0xff] }
 0x252   :  { %1297 = vmatmul.mubr.f32.gmra.mrb[40].mxu0 %v968_v7  ;;  %2865 = vperm.xlu0 %4017, %v2575_v53   ;;  %v2582_v7 = vld [vmem:[%s5579_s4 + $0x1f8] sm:$0xff]  ;;  %v865_v53 = vld [vmem:[%s5577_s2 + $0x28] sm:$0xff] }
 0x253   :  { %3649 = vmatmul.mubr.f32.gmra.mrb[56].mxu1 %v1009_v3  ;;  %1301 = vmatprep.mubr.f32.mxu0 %v972_v9  ;;  %v2581_v3 = vld [vmem:[%s5579_s4 + $0x1f0] sm:$0xff]  ;;  %v1001_v9 = vld [vmem:[#allocation3 + $0x228] sm:$0xff] }
 0x254   :  { %3651 = vmatprep.mubr.f32.mxu1 %v1012_v11  ;;  %v1075_v11 = vld [vmem:[#allocation3 + $0x478] sm:$0xff] }
 0x255   :  { %2880 = vperm.xlu1 %4018, %v2578_v58   ;;  %v1041_v58 = vld [vmem:[#allocation3 + $0x368] sm:$0xff] }
 0x256   :  { %1302 = vmatmul.mubr.f32.gmra.mrb[42].mxu0 %v971_v8  ;;  %2875 = vperm.xlu0 %4017, %v2577_v36   ;;  %v1004_v8 = vld [vmem:[#allocation3 + $0x240] sm:$0xff] }
 0x257   :  { %3652 = vmatmul.mubr.f32.gmra.mrb[58].mxu1 %v1015_v38  ;;  %1306 = vmatprep.mubr.f32.mxu0 %v975_v39  ;;  %v1081_v38 = vld [vmem:[#allocation3 + $0x4a8] sm:$0xff]  ;;  %v1008_v39 = vld [vmem:[#allocation3 + $0x260] sm:$0xff] }
 0x258   :  { %3654 = vmatprep.mubr.f32.mxu1 %v1018_v40  ;;  %v1084_v40 = vld [vmem:[#allocation3 + $0x4c0] sm:$0xff] }
 0x259   :  { %2890 = vperm.xlu1 %4018, %v2580_v63   ;;  %v868_v36 = vld [vmem:[%s5577_s2 + $0x40] sm:$0xff]  ;;  %v1043_v63 = vld [vmem:[#allocation3 + $0x378] sm:$0xff] }
 0x25a   :  { %1307 = vmatmul.mubr.f32.gmra.mrb[44].mxu0 %v974_v5  ;;  %2885 = vperm.xlu0 %4017, %v2579_v0   ;;  %v1011_v5 = vld [vmem:[#allocation3 + $0x278] sm:$0xff] }
 0x25b   :  { %3655 = vmatmul.mubr.f32.gmra.mrb[60].mxu1 %v1021_v43  ;;  %1311 = vmatprep.mubr.f32.mxu0 %v978_v44  ;;  %v1090_v43 = vld [vmem:[#allocation3 + $0x4f0] sm:$0xff]  ;;  %v871_v0 = vld [vmem:[%s5577_s2 + $0x58] sm:$0xff] }
 0x25c   :  { %3657 = vmatprep.mubr.f32.mxu1 %v1024_v45  ;;  %v1010_v44 = vld [vmem:[#allocation3 + $0x270] sm:$0xff]  ;;  %v1093_v45 = vld [vmem:[#allocation3 + $0x508] sm:$0xff] }
 0x25d   :  { %2900 = vperm.xlu1 %4018, %v2582_v7   ;;  %v1050_v7 = vld [vmem:[#allocation3 + $0x3b0] sm:$0xff] }
 0x25e   :  { %1312 = vmatmul.mubr.f32.gmra.mrb[46].mxu0 %v977_v46  ;;  %2895 = vperm.xlu0 %4017, %v2581_v3   ;;  %v1013_v46 = vld [vmem:[#allocation3 + $0x288] sm:$0xff]  ;;  %v874_v3 = vld [vmem:[%s5577_s2 + $0x70] sm:$0xff] }
 0x25f   :  { %3658 = vmatmul.mubr.f32.gmra.mrb[62].mxu1 %v1027_v18  ;;  %1316 = vmatprep.mubr.f32.mxu0 %v981_v47  ;;  %v1099_v18 = vld [vmem:[#allocation3 + $0x538] sm:$0xff]  ;;  %v1017_v47 = vld [vmem:[#allocation3 + $0x2a8] sm:$0xff] }
 0x260   :  { %3660 = vmatprep.mubr.f32.mxu1 %v1030_v48  ;;  %v1102_v48 = vld [vmem:[#allocation3 + $0x550] sm:$0xff] }
 0x262   :  { %1317 = vmatmul.mubr.f32.gmra.mrb[48].mxu0 %v980_v14  ;;  %v1020_v14 = vld [vmem:[#allocation3 + $0x2c0] sm:$0xff] }
 0x263   :  { %3661 = vmatmul.mubr.f32.gmra.mrb[64].mxu1 %v1033_v49  ;;  %1321 = vmatprep.mubr.f32.mxu0 %v984_v23  ;;  %v1108_v49 = vld [vmem:[#allocation3 + $0x580] sm:$0xff]  ;;  %v1019_v23 = vld [vmem:[#allocation3 + $0x2b8] sm:$0xff] }
 0x264   :  { %3663 = vmatprep.mubr.f32.mxu1 %v1036_v50  ;;  %v1111_v50 = vld [vmem:[#allocation3 + $0x598] sm:$0xff] }
 0x266   :  { %1322 = vmatmul.mubr.f32.gmra.mrb[50].mxu0 %v983_v16  ;;  %v1022_v16 = vld [vmem:[#allocation3 + $0x2d0] sm:$0xff] }
 0x267   :  { %3664 = vmatmul.mubr.f32.gmra.mrb[66].mxu1 %v1039_v17  ;;  %1326 = vmatprep.mubr.f32.mxu0 %v987_v20  ;;  %v1117_v17 = vld [vmem:[#allocation3 + $0x5c8] sm:$0xff]  ;;  %v1026_v20 = vld [vmem:[#allocation3 + $0x2f0] sm:$0xff] }
 0x268   :  { %3666 = vmatprep.mubr.f32.mxu1 %v1042_v21  ;;  %v1120_v21 = vld [vmem:[#allocation3 + $0x5e0] sm:$0xff] }
 0x26a   :  { %1327 = vmatmul.mubr.f32.gmra.mrb[52].mxu0 %v986_v27  ;;  %v1029_v27 = vld [vmem:[#allocation3 + $0x308] sm:$0xff] }
 0x26b   :  { %3667 = vmatmul.mubr.f32.gmra.mrb[68].mxu1 %v1045_v28  ;;  %1331 = vmatprep.mubr.f32.mxu0 %v990_v29  ;;  %v860_v28 = vld [vmem:[%s5577_s2] sm:$0xff] }
 0x26c   :  { %3669 = vmatprep.mubr.f32.mxu1 %v1048_v30  ;;  %v1028_v29 = vld [vmem:[#allocation3 + $0x300] sm:$0xff]  ;;  %v861_v30 = vld [vmem:[%s5577_s2 + $0x8] sm:$0xff] }
 0x26e   :  { %1332 = vmatmul.mubr.f32.gmra.mrb[54].mxu0 %v989_v33  ;;  %v1031_v33 = vld [vmem:[#allocation3 + $0x318] sm:$0xff] }
 0x26f   :  { %3670 = vmatmul.mubr.f32.gmra.mrb[70].mxu1 %v1051_v34  ;;  %1336 = vmatprep.mubr.f32.mxu0 %v993_v35  ;;  %v863_v34 = vld [vmem:[%s5577_s2 + $0x18] sm:$0xff] }
 0x270   :  { %3672 = vmatprep.mubr.f32.mxu1 %v1054_v51  ;;  %v1035_v35 = vld [vmem:[#allocation3 + $0x338] sm:$0xff]  ;;  %v864_v51 = vld [vmem:[%s5577_s2 + $0x20] sm:$0xff] }
 0x272   :  { %1337 = vmatmul.mubr.f32.gmra.mrb[56].mxu0 %v992_v54  ;;  %v1038_v54 = vld [vmem:[#allocation3 + $0x350] sm:$0xff] }
 0x273   :  { %3673 = vmatmul.mubr.f32.gmra.mrb[72].mxu1 %v1057_v55  ;;  %1341 = vmatprep.mubr.f32.mxu0 %v996_v56  ;;  %v866_v55 = vld [vmem:[%s5577_s2 + $0x30] sm:$0xff]  ;;  %v1037_v56 = vld [vmem:[#allocation3 + $0x348] sm:$0xff] }
 0x274   :  { %3675 = vmatprep.mubr.f32.mxu1 %v1060_v57  ;;  %v867_v57 = vld [vmem:[%s5577_s2 + $0x38] sm:$0xff] }
 0x276   :  { %1342 = vmatmul.mubr.f32.gmra.mrb[58].mxu0 %v995_v59  ;;  %v1040_v59 = vld [vmem:[#allocation3 + $0x360] sm:$0xff] }
 0x277   :  { %3676 = vmatmul.mubr.f32.gmra.mrb[74].mxu1 %v1063_v60  ;;  %1346 = vmatprep.mubr.f32.mxu0 %v999_v61  ;;  %v869_v60 = vld [vmem:[%s5577_s2 + $0x48] sm:$0xff]  ;;  %v1044_v61 = vld [vmem:[#allocation3 + $0x380] sm:$0xff] }
 0x278   :  { %3678 = vmatprep.mubr.f32.mxu1 %v1066_v62  ;;  %v870_v62 = vld [vmem:[%s5577_s2 + $0x50] sm:$0xff] }
 0x27a   :  { %1347 = vmatmul.mubr.f32.gmra.mrb[60].mxu0 %v998_v1  ;;  %v1047_v1 = vld [vmem:[#allocation3 + $0x398] sm:$0xff] }
 0x27b   :  { %3679 = vmatmul.mubr.f32.gmra.mrb[76].mxu1 %v1069_v2  ;;  %1351 = vmatprep.mubr.f32.mxu0 %v1002_v4  ;;  %v872_v2 = vld [vmem:[%s5577_s2 + $0x60] sm:$0xff]  ;;  %v1046_v4 = vld [vmem:[#allocation3 + $0x390] sm:$0xff] }
 0x27c   :  { %3681 = vmatprep.mubr.f32.mxu1 %v1072_v6  ;;  %v873_v6 = vld [vmem:[%s5577_s2 + $0x68] sm:$0xff] }
 0x27e   :  { %1352 = vmatmul.mubr.f32.gmra.mrb[62].mxu0 %v1001_v9  ;;  %v1049_v9 = vld [vmem:[#allocation3 + $0x3a8] sm:$0xff] }
 0x27f   :  { %3682 = vmatmul.mubr.f32.gmra.mrb[78].mxu1 %v1075_v11  ;;  %1356 = vmatprep.mubr.f32.mxu0 %v1005_v12  ;;  %v875_v11 = vld [vmem:[%s5577_s2 + $0x78] sm:$0xff]  ;;  %v1053_v12 = vld [vmem:[#allocation3 + $0x3c8] sm:$0xff] }
 0x280   :  { %3684 = vmatprep.mubr.f32.mxu1 %v1078_v13  ;;  %v876_v13 = vld [vmem:[%s5577_s2 + $0x80] sm:$0xff] }
 0x282   :  { %1357 = vmatmul.mubr.f32.gmra.mrb[64].mxu0 %v1004_v8  ;;  %v1052_v8 = vld [vmem:[#allocation3 + $0x3c0] sm:$0xff] }
 0x283   :  { %3685 = vmatmul.mubr.f32.gmra.mrb[80].mxu1 %v1081_v38  ;;  %1361 = vmatprep.mubr.f32.mxu0 %v1008_v39  ;;  %v877_v38 = vld [vmem:[%s5577_s2 + $0x88] sm:$0xff]  ;;  %v1056_v39 = vld [vmem:[#allocation3 + $0x3e0] sm:$0xff] }
 0x284   :  { %3687 = vmatprep.mubr.f32.mxu1 %v1084_v40  ;;  %v878_v40 = vld [vmem:[%s5577_s2 + $0x90] sm:$0xff] }
 0x286   :  { %1362 = vmatmul.mubr.f32.gmra.mrb[66].mxu0 %v1007_v37  ;;  %v1055_v37 = vld [vmem:[#allocation3 + $0x3d8] sm:$0xff] }
 0x287   :  { %3688 = vmatmul.mubr.f32.gmra.mrb[82].mxu1 %v1087_v41  ;;  %1366 = vmatprep.mubr.f32.mxu0 %v1011_v5  ;;  %v879_v41 = vld [vmem:[%s5577_s2 + $0x98] sm:$0xff] }
 0x288   :  { %3690 = vmatprep.mubr.f32.mxu1 %v1090_v43  ;;  %v1059_v5 = vld [vmem:[#allocation3 + $0x3f8] sm:$0xff]  ;;  %v880_v43 = vld [vmem:[%s5577_s2 + $0xa0] sm:$0xff] }
 0x28a   :  { %1367 = vmatmul.mubr.f32.gmra.mrb[68].mxu0 %v1010_v44  ;;  %v1058_v44 = vld [vmem:[#allocation3 + $0x3f0] sm:$0xff] }
 0x28b   :  { %3691 = vmatmul.mubr.f32.gmra.mrb[84].mxu1 %v1093_v45  ;;  %1371 = vmatprep.mubr.f32.mxu0 %v1014_v42  ;;  %v881_v45 = vld [vmem:[%s5577_s2 + $0xa8] sm:$0xff]  ;;  %v1062_v42 = vld [vmem:[#allocation3 + $0x410] sm:$0xff] }
 0x28c   :  { %3693 = vmatprep.mubr.f32.mxu1 %v1096_v15  ;;  %v882_v15 = vld [vmem:[%s5577_s2 + $0xb0] sm:$0xff] }
 0x28e   :  { %1372 = vmatmul.mubr.f32.gmra.mrb[70].mxu0 %v1013_v46  ;;  %v1061_v46 = vld [vmem:[#allocation3 + $0x408] sm:$0xff] }
 0x28f   :  { %3694 = vmatmul.mubr.f32.gmra.mrb[86].mxu1 %v1099_v18  ;;  %1376 = vmatprep.mubr.f32.mxu0 %v1017_v47  ;;  %v883_v18 = vld [vmem:[%s5577_s2 + $0xb8] sm:$0xff]  ;;  %v1065_v47 = vld [vmem:[#allocation3 + $0x428] sm:$0xff] }
 0x290   :  { %3696 = vmatprep.mubr.f32.mxu1 %v1102_v48  ;;  %v884_v48 = vld [vmem:[%s5577_s2 + $0xc0] sm:$0xff] }
 0x292   :  { %1377 = vmatmul.mubr.f32.gmra.mrb[72].mxu0 %v1016_v19  ;;  %v1064_v19 = vld [vmem:[#allocation3 + $0x420] sm:$0xff] }
 0x293   :  { %3697 = vmatmul.mubr.f32.gmra.mrb[88].mxu1 %v1105_v22  ;;  %1381 = vmatprep.mubr.f32.mxu0 %v1020_v14  ;;  %v885_v22 = vld [vmem:[%s5577_s2 + $0xc8] sm:$0xff]  ;;  %v1068_v14 = vld [vmem:[#allocation3 + $0x440] sm:$0xff] }
 0x294   :  { %3699 = vmatprep.mubr.f32.mxu1 %v1108_v49  ;;  %v886_v49 = vld [vmem:[%s5577_s2 + $0xd0] sm:$0xff] }
 0x296   :  { %1382 = vmatmul.mubr.f32.gmra.mrb[74].mxu0 %v1019_v23  ;;  %v1067_v23 = vld [vmem:[#allocation3 + $0x438] sm:$0xff] }
 0x297   :  { %3700 = vmatmul.mubr.f32.gmra.mrb[90].mxu1 %v1111_v50  ;;  %1386 = vmatprep.mubr.f32.mxu0 %v1023_v26  ;;  %v887_v50 = vld [vmem:[%s5577_s2 + $0xd8] sm:$0xff] }
 0x298   :  { %3702 = vmatprep.mubr.f32.mxu1 %v1114_v10  ;;  %v1071_v26 = vld [vmem:[#allocation3 + $0x458] sm:$0xff]  ;;  %v888_v10 = vld [vmem:[%s5577_s2 + $0xe0] sm:$0xff] }
 0x29a   :  { %1387 = vmatmul.mubr.f32.gmra.mrb[76].mxu0 %v1022_v16  ;;  %v1070_v16 = vld [vmem:[#allocation3 + $0x450] sm:$0xff] }
 0x29b   :  { %3703 = vmatmul.mubr.f32.gmra.mrb[92].mxu1 %v1117_v17  ;;  %1391 = vmatprep.mubr.f32.mxu0 %v1026_v20  ;;  %v889_v17 = vld [vmem:[%s5577_s2 + $0xe8] sm:$0xff]  ;;  %v1074_v20 = vld [vmem:[#allocation3 + $0x470] sm:$0xff] }
 0x29c   :  { %3705 = vmatprep.mubr.f32.mxu1 %v1120_v21  ;;  %v890_v21 = vld [vmem:[%s5577_s2 + $0xf0] sm:$0xff] }
 0x29e   :  { %1392 = vmatmul.mubr.f32.gmra.mrb[78].mxu0 %v1025_v24  ;;  %v1073_v24 = vld [vmem:[#allocation3 + $0x468] sm:$0xff] }
 0x29f   :  { %3706 = vmatmul.mubr.f32.gmra.mrb[94].mxu1 %v1123_v25  ;;  %1396 = vmatprep.mubr.f32.mxu0 %v1029_v27  ;;  %v891_v25 = vld [vmem:[%s5577_s2 + $0xf8] sm:$0xff]  ;;  %v1077_v27 = vld [vmem:[#allocation3 + $0x488] sm:$0xff] }
 0x2a0   :  { %3724 = vmatprep.mubr.msk.f32.mxu1 %vm50_vm0, %v860_v28  ;;  %v892_v28 = vld [vmem:[%s5577_s2 + $0x100] sm:$0xff] }
 0x2a2   :  { %1397 = vmatmul.mubr.f32.gmra.mrb[80].mxu0 %v1028_v29  ;;  %v1076_v29 = vld [vmem:[#allocation3 + $0x480] sm:$0xff] }
 0x2a3   :  { %3725 = vmatmul.mubr.msk.f32.vlgmr.msra.gmra.mrb[96].mxu1 %vm50_vm0, %v861_v30  ;;  %1401 = vmatprep.mubr.f32.mxu0 %v1032_v31  ;;  %v893_v30 = vld [vmem:[%s5577_s2 + $0x108] sm:$0xff]  ;;  %v1080_v31 = vld [vmem:[#allocation3 + $0x4a0] sm:$0xff] }
 0x2a4   :  { %3727 = vmatprep.mubr.msk.f32.mxu1 %vm50_vm0, %v862_v32  ;;  %v894_v32 = vld [vmem:[%s5577_s2 + $0x110] sm:$0xff] }
 0x2a6   :  { %1402 = vmatmul.mubr.f32.gmra.mrb[82].mxu0 %v1031_v33  ;;  %v1079_v33 = vld [vmem:[#allocation3 + $0x498] sm:$0xff] }
 0x2a7   :  { %3728 = vmatmul.mubr.msk.f32.gmra.mrb[98].mxu1 %vm50_vm0, %v863_v34  ;;  %1406 = vmatprep.mubr.f32.mxu0 %v1035_v35  ;;  %v895_v34 = vld [vmem:[%s5577_s2 + $0x118] sm:$0xff] }
 0x2a8   :  { %3730 = vmatprep.mubr.msk.f32.mxu1 %vm50_vm0, %v864_v51  ;;  %v1083_v35 = vld [vmem:[#allocation3 + $0x4b8] sm:$0xff]  ;;  %v896_v51 = vld [vmem:[%s5577_s2 + $0x120] sm:$0xff] }
 0x2aa   :  { %1407 = vmatmul.mubr.f32.gmra.mrb[84].mxu0 %v1034_v52  ;;  %v1082_v52 = vld [vmem:[#allocation3 + $0x4b0] sm:$0xff] }
 0x2ab   :  { %3731 = vmatmul.mubr.msk.f32.gmra.mrb[100].mxu1 %vm50_vm0, %v865_v53  ;;  %1411 = vmatprep.mubr.f32.mxu0 %v1038_v54  ;;  %v897_v53 = vld [vmem:[%s5577_s2 + $0x128] sm:$0xff]  ;;  %v1086_v54 = vld [vmem:[#allocation3 + $0x4d0] sm:$0xff] }
 0x2ac   :  { %3733 = vmatprep.mubr.msk.f32.mxu1 %vm50_vm0, %v866_v55  ;;  %v898_v55 = vld [vmem:[%s5577_s2 + $0x130] sm:$0xff] }
 0x2ae   :  { %1412 = vmatmul.mubr.f32.gmra.mrb[86].mxu0 %v1037_v56  ;;  %v1085_v56 = vld [vmem:[#allocation3 + $0x4c8] sm:$0xff] }
 0x2af   :  { %3734 = vmatmul.mubr.msk.f32.gmra.mrb[102].mxu1 %vm50_vm0, %v867_v57  ;;  %1416 = vmatprep.mubr.f32.mxu0 %v1041_v58  ;;  %v899_v57 = vld [vmem:[%s5577_s2 + $0x138] sm:$0xff]  ;;  %v1089_v58 = vld [vmem:[#allocation3 + $0x4e8] sm:$0xff] }
 0x2b0   :  { %3736 = vmatprep.mubr.msk.f32.mxu1 %vm50_vm0, %v868_v36  ;;  %v900_v36 = vld [vmem:[%s5577_s2 + $0x140] sm:$0xff] }
 0x2b2   :  { %1417 = vmatmul.mubr.f32.gmra.mrb[88].mxu0 %v1040_v59  ;;  %v1088_v59 = vld [vmem:[#allocation3 + $0x4e0] sm:$0xff] }
 0x2b3   :  { %3737 = vmatmul.mubr.msk.f32.gmra.mrb[104].mxu1 %vm50_vm0, %v869_v60  ;;  %1421 = vmatprep.mubr.f32.mxu0 %v1044_v61  ;;  %v901_v60 = vld [vmem:[%s5577_s2 + $0x148] sm:$0xff]  ;;  %v1092_v61 = vld [vmem:[#allocation3 + $0x500] sm:$0xff] }
 0x2b4   :  { %3739 = vmatprep.mubr.msk.f32.mxu1 %vm50_vm0, %v870_v62  ;;  %v902_v62 = vld [vmem:[%s5577_s2 + $0x150] sm:$0xff] }
 0x2b6   :  { %1422 = vmatmul.mubr.f32.gmra.mrb[90].mxu0 %v1043_v63  ;;  %v1091_v63 = vld [vmem:[#allocation3 + $0x4f8] sm:$0xff] }
 0x2b7   :  { %3740 = vmatmul.mubr.msk.f32.gmra.mrb[106].mxu1 %vm50_vm0, %v871_v0  ;;  %1426 = vmatprep.mubr.f32.mxu0 %v1047_v1  ;;  %v903_v0 = vld [vmem:[%s5577_s2 + $0x158] sm:$0xff] }
 0x2b8   :  { %3742 = vmatprep.mubr.msk.f32.mxu1 %vm50_vm0, %v872_v2  ;;  %v1095_v1 = vld [vmem:[#allocation3 + $0x518] sm:$0xff] }
 0x2ba   :  { %1427 = vmatmul.mubr.f32.gmra.mrb[92].mxu0 %v1046_v4  ;;  %v904_v4 = vld [vmem:[%s5577_s2 + $0x160] sm:$0xff] }
 0x2bb   :  { %3743 = vmatmul.mubr.msk.f32.gmra.mrb[108].mxu1 %vm50_vm0, %v873_v6  ;;  %1431 = vmatprep.mubr.f32.mxu0 %v1050_v7 }
 0x2bc   :  { %3745 = vmatprep.mubr.msk.f32.mxu1 %vm50_vm0, %v874_v3 }
 0x2be   :  { %1432 = vmatmul.mubr.f32.gmra.mrb[94].mxu0 %v1049_v9  ;;  %v1094_v9 = vld [vmem:[#allocation3 + $0x510] sm:$0xff] }
 0x2bf   :  { %3746 = vmatmul.mubr.msk.f32.gmra.mrb[110].mxu1 %vm50_vm0, %v875_v11  ;;  %1436 = vmatprep.mubr.f32.mxu0 %v1053_v12  ;;  %v905_v12 = vld [vmem:[%s5577_s2 + $0x168] sm:$0xff] }
 0x2c0   :  { %3748 = vmatprep.mubr.msk.f32.mxu1 %vm50_vm0, %v876_v13  ;;  %v1098_v13 = vld [vmem:[#allocation3 + $0x530] sm:$0xff] }
 0x2c2   :  { %1437 = vmatmul.mubr.f32.gmra.mrb[96].mxu0 %v1052_v8 }
 0x2c3   :  { %3749 = vmatmul.mubr.msk.f32.gmra.mrb[112].mxu1 %vm50_vm0, %v877_v38  ;;  %1441 = vmatprep.mubr.f32.mxu0 %v1056_v39  ;;  %v906_v38 = vld [vmem:[%s5577_s2 + $0x170] sm:$0xff] }
 0x2c4   :  { %3751 = vmatprep.mubr.msk.f32.mxu1 %vm50_vm0, %v878_v40 }
 0x2c6   :  { %1442 = vmatmul.mubr.f32.gmra.mrb[98].mxu0 %v1055_v37 }
 0x2c7   :  { %3752 = vmatmul.mubr.msk.f32.gmra.mrb[114].mxu1 %vm50_vm0, %v879_v41  ;;  %1446 = vmatprep.mubr.f32.mxu0 %v1059_v5  ;;  %v1097_v5 = vld [vmem:[#allocation3 + $0x528] sm:$0xff] }
 0x2c8   :  { %3754 = vmatprep.mubr.msk.f32.mxu1 %vm50_vm0, %v880_v43  ;;  %v907_v43 = vld [vmem:[%s5577_s2 + $0x178] sm:$0xff] }
 0x2ca   :  { %1447 = vmatmul.mubr.f32.gmra.mrb[100].mxu0 %v1058_v44  ;;  %v1101_v44 = vld [vmem:[#allocation3 + $0x548] sm:$0xff] }
 0x2cb   :  { %3755 = vmatmul.mubr.msk.f32.gmra.mrb[116].mxu1 %vm50_vm0, %v881_v45  ;;  %1451 = vmatprep.mubr.f32.mxu0 %v1062_v42  ;;  %v908_v42 = vld [vmem:[%s5577_s2 + $0x180] sm:$0xff] }
 0x2cc   :  { %3757 = vmatprep.mubr.msk.f32.mxu1 %vm50_vm0, %v882_v15 }
 0x2ce   :  { %1452 = vmatmul.mubr.f32.gmra.mrb[102].mxu0 %v1061_v46 }
 0x2cf   :  { %3758 = vmatmul.mubr.msk.f32.gmra.mrb[118].mxu1 %vm50_vm0, %v883_v18  ;;  %1456 = vmatprep.mubr.f32.mxu0 %v1065_v47 }
 0x2d0   :  { %3760 = vmatprep.mubr.msk.f32.mxu1 %vm50_vm0, %v884_v48  ;;  %v1100_v48 = vld [vmem:[#allocation3 + $0x540] sm:$0xff] }
 0x2d2   :  { %1457 = vmatmul.mubr.f32.gmra.mrb[104].mxu0 %v1064_v19  ;;  %v909_v19 = vld [vmem:[%s5577_s2 + $0x188] sm:$0xff] }
 0x2d3   :  { %3761 = vmatmul.mubr.msk.f32.gmra.mrb[120].mxu1 %vm50_vm0, %v885_v22  ;;  %1461 = vmatprep.mubr.f32.mxu0 %v1068_v14  ;;  %v1104_v22 = vld [vmem:[#allocation3 + $0x560] sm:$0xff] }
 0x2d4   :  { %3763 = vmatprep.mubr.msk.f32.mxu1 %vm50_vm0, %v886_v49  ;;  %v910_v49 = vld [vmem:[%s5577_s2 + $0x190] sm:$0xff] }
 0x2d6   :  { %1462 = vmatmul.mubr.f32.gmra.mrb[106].mxu0 %v1067_v23 }
 0x2d7   :  { %3764 = vmatmul.mubr.msk.f32.gmra.mrb[122].mxu1 %vm50_vm0, %v887_v50  ;;  %1466 = vmatprep.mubr.f32.mxu0 %v1071_v26 }
 0x2d8   :  { %3766 = vmatprep.mubr.msk.f32.mxu1 %vm50_vm0, %v888_v10 }
 0x2da   :  { %1467 = vmatmul.mubr.f32.gmra.mrb[108].mxu0 %v1070_v16  ;;  %v1103_v16 = vld [vmem:[#allocation3 + $0x558] sm:$0xff] }
 0x2db   :  { %3767 = vmatmul.mubr.msk.f32.gmra.mrb[124].mxu1 %vm50_vm0, %v889_v17  ;;  %1471 = vmatprep.mubr.f32.mxu0 %v1074_v20  ;;  %v911_v17 = vld [vmem:[%s5577_s2 + $0x198] sm:$0xff] }
 0x2dc   :  { %3769 = vmatprep.mubr.msk.f32.mxu1 %vm50_vm0, %v890_v21  ;;  %v1107_v20 = vld [vmem:[#allocation3 + $0x578] sm:$0xff] }
 0x2de   :  { %1472 = vmatmul.mubr.f32.gmra.mrb[110].mxu0 %v1073_v24  ;;  %v912_v24 = vld [vmem:[%s5577_s2 + $0x1a0] sm:$0xff] }
 0x2df   :  { %3770 = vmatmul.mubr.msk.f32.gmra.mrb[126].mxu1 %vm50_vm0, %v891_v25  ;;  %1476 = vmatprep.mubr.f32.mxu0 %v1077_v27 }
 0x2e0   :  { %3772 = vmatprep.mubr.msk.f32.mxu1 %vm50_vm0, %v892_v28 }
 0x2e2   :  { %1477 = vmatmul.mubr.f32.gmra.mrb[112].mxu0 %v1076_v29 }
 0x2e3   :  { %3773 = vmatmul.mubr.msk.f32.gmra.mrb[128].mxu1 %vm50_vm0, %v893_v30  ;;  %1481 = vmatprep.mubr.f32.mxu0 %v1080_v31  ;;  %v1106_v30 = vld [vmem:[#allocation3 + $0x570] sm:$0xff]  ;;  %v913_v31 = vld [vmem:[%s5577_s2 + $0x1a8] sm:$0xff] }
 0x2e4   :  { %3775 = vmatprep.mubr.msk.f32.mxu1 %vm50_vm0, %v894_v32  ;;  %v1110_v32 = vld [vmem:[#allocation3 + $0x590] sm:$0xff] }
 0x2e6   :  { %1482 = vmatmul.mubr.f32.gmra.mrb[114].mxu0 %v1079_v33 }
 0x2e7   :  { %3776 = vmatmul.mubr.msk.f32.gmra.mrb[130].mxu1 %vm50_vm0, %v895_v34  ;;  %1486 = vmatprep.mubr.f32.mxu0 %v1083_v35  ;;  %v914_v34 = vld [vmem:[%s5577_s2 + $0x1b0] sm:$0xff] }
 0x2e8   :  { %3778 = vmatprep.mubr.msk.f32.mxu1 %vm50_vm0, %v896_v51 }
 0x2ea   :  { %1487 = vmatmul.mubr.f32.gmra.mrb[116].mxu0 %v1082_v52 }
 0x2eb   :  { %3779 = vmatmul.mubr.msk.f32.gmra.mrb[132].mxu1 %vm50_vm0, %v897_v53  ;;  %1491 = vmatprep.mubr.f32.mxu0 %v1086_v54  ;;  %v1109_v54 = vld [vmem:[#allocation3 + $0x588] sm:$0xff] }
 0x2ec   :  { %3781 = vmatprep.mubr.msk.f32.mxu1 %vm50_vm0, %v898_v55  ;;  %v915_v55 = vld [vmem:[%s5577_s2 + $0x1b8] sm:$0xff] }
 0x2ee   :  { %1492 = vmatmul.mubr.f32.gmra.mrb[118].mxu0 %v1085_v56  ;;  %v1113_v56 = vld [vmem:[#allocation3 + $0x5a8] sm:$0xff] }
 0x2ef   :  { %3782 = vmatmul.mubr.msk.f32.gmra.mrb[134].mxu1 %vm50_vm0, %v899_v57  ;;  %1496 = vmatprep.mubr.f32.mxu0 %v1089_v58  ;;  %v916_v58 = vld [vmem:[%s5577_s2 + $0x1c0] sm:$0xff] }
 0x2f0   :  { %3784 = vmatprep.mubr.msk.f32.mxu1 %vm50_vm0, %v900_v36 }
 0x2f2   :  { %1497 = vmatmul.mubr.f32.gmra.mrb[120].mxu0 %v1088_v59 }
 0x2f3   :  { %3785 = vmatmul.mubr.msk.f32.gmra.mrb[136].mxu1 %vm50_vm0, %v901_v60  ;;  %1501 = vmatprep.mubr.f32.mxu0 %v1092_v61 }
 0x2f4   :  { %3787 = vmatprep.mubr.msk.f32.mxu1 %vm50_vm0, %v902_v62  ;;  %v1112_v62 = vld [vmem:[#allocation3 + $0x5a0] sm:$0xff] }
 0x2f5   :  { %v1238_v2 = vpop.f32.mrb[16].mxu0 }
 0x2f6   :  { %v1240_v6 = vpop.f32.mrb[17].mxu0  ;;  %1502 = vmatmul.mubr.f32.gmra.mrb[122].mxu0 %v1091_v63  ;;  %v3614_v7 = vpop.f32.mrb[32].mxu1  ;;  %v917_v63 = vld [vmem:[%s5577_s2 + $0x1c8] sm:$0xff] }
 0x2f7   :  { %v1623_v3 = vpop.f32.mrb[33].mxu1  ;;  %3788 = vmatmul.mubr.msk.f32.gmra.mrb[138].mxu1 %vm50_vm0, %v903_v0  ;;  %1506 = vmatprep.mubr.f32.mxu0 %v1095_v1  ;;  %v1116_v0 = vld [vmem:[#allocation3 + $0x5c0] sm:$0xff] }
 0x2f8   :  { %v4813_v11 = vadd.f32 %v1623_v3, %v1238_v2  ;;  %3790 = vmatprep.mubr.msk.f32.mxu1 %vm50_vm0, %v904_v4  ;;  %v918_v2 = vld [vmem:[%s5577_s2 + $0x1d0] sm:$0xff] }
 0x2f9   :  { %v1243_v8 = vpop.f32.mrb[18].mxu0 }
 0x2fa   :  { %v4822_v39 = vadd.f32 %v3614_v7, %v1243_v8  ;;  %v1245_v40 = vpop.f32.mrb[19].mxu0  ;;  %1507 = vmatmul.mubr.f32.gmra.mrb[124].mxu0 %v1094_v9  ;;  %v3617_v37 = vpop.f32.mrb[34].mxu1  ;;  %v1115_v9 = vld [vmem:[#allocation3 + $0x5b8] sm:$0xff] }
 0x2fb   :  { %v1633_v41 = vpop.f32.mrb[35].mxu1  ;;  %3791 = vmatmul.mubr.msk.f32.gmra.mrb[140].mxu1 %vm50_vm0, %v905_v12  ;;  %1511 = vmatprep.mubr.f32.mxu0 %v1098_v13  ;;  %v919_v12 = vld [vmem:[%s5577_s2 + $0x1d8] sm:$0xff] }
 0x2fc   :  { %3793 = vmatprep.mubr.msk.f32.mxu1 %vm50_vm0, %v906_v38  ;;  %v1119_v13 = vld [vmem:[#allocation3 + $0x5d8] sm:$0xff]  ;;  %v920_v38 = vld [vmem:[%s5577_s2 + $0x1e0] sm:$0xff] }
 0x2fd   :  { %v1248_v45 = vpop.f32.mrb[20].mxu0 }
 0x2fe   :  { %v4832_v15 = vadd.f32 %v1633_v41, %v1248_v45  ;;  %v1250_v46 = vpop.f32.mrb[21].mxu0  ;;  %1512 = vmatmul.mubr.f32.gmra.mrb[126].mxu0 %v1097_v5  ;;  %v3620_v18 = vpop.f32.mrb[36].mxu1  ;;  %v1122_v45 = vld [vmem:[#allocation3 + $0x5f0] sm:$0xff] }
 0x2ff   :  { %v1643_v47 = vpop.f32.mrb[37].mxu1  ;;  %3794 = vmatmul.mubr.msk.f32.gmra.mrb[142].mxu1 %vm50_vm0, %v907_v43  ;;  %1516 = vmatprep.mubr.f32.mxu0 %v1101_v44  ;;  %v1118_v43 = vld [vmem:[#allocation3 + $0x5d0] sm:$0xff]  ;;  %v921_v44 = vld [vmem:[%s5577_s2 + $0x1e8] sm:$0xff] }
 0x300   :  { %3796 = vmatprep.mubr.msk.f32.mxu1 %vm50_vm0, %v908_v42  ;;  %v922_v46 = vld [vmem:[%s5577_s2 + $0x1f0] sm:$0xff] }
 0x301   :  { %v1253_v14 = vpop.f32.mrb[22].mxu0 }
 0x302   :  { %v4842_v23 = vadd.f32 %v3617_v37, %v1253_v14  ;;  %v1255_v50 = vpop.f32.mrb[23].mxu0  ;;  %1517 = vmatmul.mubr.f32.gmra.mrb[128].mxu0 %v1100_v48  ;;  %v3623_v26 = vpop.f32.mrb[38].mxu1  ;;  %v923_v14 = vld [vmem:[%s5577_s2 + $0x1f8] sm:$0xff] }
 0x303   :  { %v1653_v10 = vpop.f32.mrb[39].mxu1  ;;  %3797 = vmatmul.mubr.msk.f32.gmra.mrb[144].mxu1 %vm50_vm0, %v909_v19  ;;  %1521 = vmatprep.mubr.f32.mxu0 %v1104_v22  ;;  %v1121_v22 = vld [vmem:[#allocation3 + $0x5e8] sm:$0xff] }
 0x304   :  { %3799 = vmatprep.mubr.msk.f32.mxu1 %vm50_vm0, %v910_v49 }
 0x305   :  { %v1258_v21 = vpop.f32.mrb[24].mxu0 }
 0x306   :  { %v4852_v25 = vadd.f32 %v1643_v47, %v1258_v21  ;;  %v1260_v27 = vpop.f32.mrb[25].mxu0  ;;  %1522 = vmatmul.mubr.f32.gmra.mrb[130].mxu0 %v1103_v16  ;;  %v3626_v28 = vpop.f32.mrb[40].mxu1 }
 0x307   :  { %v1663_v29 = vpop.f32.mrb[41].mxu1  ;;  %3800 = vmatmul.mubr.msk.f32.gmra.mrb[146].mxu1 %vm50_vm0, %v911_v17  ;;  %1526 = vmatprep.mubr.f32.mxu0 %v1107_v20 }
 0x308   :  { %3802 = vmatprep.mubr.msk.f32.mxu1 %vm50_vm0, %v912_v24 }
 0x309   :  { %v1263_v33 = vpop.f32.mrb[26].mxu0 }
 0x30a   :  { %v4862_v35 = vadd.f32 %v3620_v18, %v1263_v33  ;;  %v1265_v51 = vpop.f32.mrb[27].mxu0  ;;  %1527 = vmatmul.mubr.f32.gmra.mrb[132].mxu0 %v1106_v30  ;;  %v4864_v52 = vpop.f32.mrb[42].mxu1 }
 0x30b   :  { %v1673_v53 = vpop.f32.mrb[43].mxu1  ;;  %3803 = vmatmul.mubr.msk.f32.gmra.mrb[148].mxu1 %vm50_vm0, %v913_v31  ;;  %1531 = vmatprep.mubr.f32.mxu0 %v1110_v32 }
 0x30c   :  { %3805 = vmatprep.mubr.msk.f32.mxu1 %vm50_vm0, %v914_v34 }
 0x30d   :  { %v1268_v57 = vpop.f32.mrb[28].mxu0 }
 0x30e   :  { %v4874_v36 = vadd.f32 %v1653_v10, %v1268_v57  ;;  %v1270_v59 = vpop.f32.mrb[29].mxu0  ;;  %1532 = vmatmul.mubr.f32.gmra.mrb[134].mxu0 %v1109_v54  ;;  %v4876_v60 = vpop.f32.mrb[44].mxu1 }
 0x30f   :  { %v1683_v61 = vpop.f32.mrb[45].mxu1  ;;  %3806 = vmatmul.mubr.msk.f32.gmra.mrb[150].mxu1 %vm50_vm0, %v915_v55  ;;  %1536 = vmatprep.mubr.f32.mxu0 %v1113_v56 }
 0x310   :  { %3808 = vmatprep.mubr.msk.f32.mxu1 %vm50_vm0, %v916_v58 }
 0x311   :  { %v1273_v1 = vpop.f32.mrb[30].mxu0 }
 0x312   :  { %v4886_v4 = vadd.f32 %v3623_v26, %v1273_v1  ;;  %v1275_v6 = vpop.f32.mrb[31].mxu0  ;;  %1537 = vmatmul.mubr.f32.gmra.mrb[136].mxu0 %v1112_v62  ;;  %v3635_v7 = vpop.f32.mrb[46].mxu1 }
 0x313   :  { %v1693_v3 = vpop.f32.mrb[47].mxu1  ;;  %3809 = vmatmul.mubr.msk.f32.gmra.mrb[152].mxu1 %vm50_vm0, %v917_v63  ;;  %1541 = vmatprep.mubr.f32.mxu0 %v1116_v0 }
 0x314   :  { %3811 = vmatprep.mubr.msk.f32.mxu1 %vm50_vm0, %v918_v2 }
 0x315   :  { %v1278_v8 = vpop.f32.mrb[32].mxu0 }
 0x316   :  { %v4896_v40 = vadd.f32 %v1663_v29, %v1278_v8  ;;  %v1280_v37 = vpop.f32.mrb[33].mxu0  ;;  %1542 = vmatmul.mubr.f32.gmra.mrb[138].mxu0 %v1115_v9  ;;  %v3638_v41 = vpop.f32.mrb[48].mxu1 }
 0x317   :  { %v1703_v5 = vpop.f32.mrb[49].mxu1  ;;  %3812 = vmatmul.mubr.msk.f32.gmra.mrb[154].mxu1 %vm50_vm0, %v919_v12  ;;  %1546 = vmatprep.mubr.f32.mxu0 %v1119_v13  ;;  %v4952_v9 = vpop.permute.xlu1 %2595 }
 0x318   :  { %3814 = vmatprep.mubr.msk.f32.mxu1 %vm50_vm0, %v920_v38  ;;  %v4958_v38 = vpop.permute.xlu0 %2585 }
 0x319   :  { %v1283_v42 = vpop.f32.mrb[34].mxu0 }
 0x31a   :  { %v4906_v18 = vadd.f32 %v3626_v28, %v1283_v42  ;;  %v1285_v47 = vpop.f32.mrb[35].mxu0  ;;  %1547 = vmatmul.mubr.f32.gmra.mrb[140].mxu0 %v1118_v43  ;;  %v3641_v48 = vpop.f32.mrb[50].mxu1 }
 0x31b   :  { %v1713_v19 = vpop.f32.mrb[51].mxu1  ;;  %3815 = vmatmul.mubr.msk.f32.gmra.mrb[156].mxu1 %vm50_vm0, %v921_v44  ;;  %1551 = vmatprep.mubr.f32.mxu0 %v1122_v45  ;;  %v4966_v42 = vpop.permute.xlu1 %2600 }
 0x31c   :  { %3817 = vmatprep.mubr.msk.f32.mxu1 %vm50_vm0, %v922_v46  ;;  %v4970_v47 = vpop.permute.xlu0 %2590 }
 0x31d   :  { %v1288_v49 = vpop.f32.mrb[36].mxu0 }
 0x31e   :  { %v4913_v50 = vadd.f32 %v1673_v53, %v1288_v49  ;;  %v1290_v26 = vpop.f32.mrb[37].mxu0  ;;  %1552 = vmatmul.mubr.f32.gmra.mrb[142].mxu0 %v1121_v22  ;;  %v3644_v10 = vpop.f32.mrb[52].mxu1 }
 0x31f   :  { %v1723_v16 = vpop.f32.mrb[53].mxu1  ;;  %3818 = vmatmul.mubr.msk.f32.gmra.mrb[158].mxu1 %vm50_vm0, %v923_v14 }
 0x321   :  { %v1293_v17 = vpop.f32.mrb[38].mxu0 }
 0x322   :  { %v4917_v20 = vadd.f32 %v4864_v52, %v1293_v17  ;;  %v1295_v21 = vpop.f32.mrb[39].mxu0  ;;  %v4919_v24 = vpop.f32.mrb[54].mxu1 }
 0x323   :  { %v1733_v27 = vpop.f32.mrb[55].mxu1  ;;  %v4978_v17 = vpop.permute.xlu1 %2610 }
 0x325   :  { %v1298_v28 = vpop.f32.mrb[40].mxu0 }
 0x326   :  { %v4921_v29 = vadd.f32 %v1683_v61, %v1298_v28  ;;  %v1300_v30 = vpop.f32.mrb[41].mxu0  ;;  %v4923_v31 = vpop.f32.mrb[56].mxu1 }
 0x327   :  { %v4925_v32 = vpop.f32.mrb[57].mxu1 }
 0x329   :  { %v1303_v33 = vpop.f32.mrb[42].mxu0 }
 0x32a   :  { %v4928_v34 = vadd.f32 %v4876_v60, %v1303_v33  ;;  %v1305_v51 = vpop.f32.mrb[43].mxu0  ;;  %v4930_v53 = vpop.f32.mrb[58].mxu1 }
 0x32b   :  { %v4932_v52 = vpop.f32.mrb[59].mxu1  ;;  %v4984_v33 = vpop.permute.xlu0 %2605 }
 0x32d   :  { %v1308_v54 = vpop.f32.mrb[44].mxu0 }
 0x32e   :  { %v4934_v55 = vadd.f32 %v1693_v3, %v1308_v54  ;;  %v1310_v56 = vpop.f32.mrb[45].mxu0  ;;  %v4936_v57 = vpop.f32.mrb[60].mxu1 }
 0x32f   :  { %v4938_v58 = vpop.f32.mrb[61].mxu1 }
 0x331   :  { %v1313_v59 = vpop.f32.mrb[46].mxu0 }
 0x332   :  { %v4940_v61 = vadd.f32 %v3635_v7, %v1313_v59  ;;  %v1315_v62 = vpop.f32.mrb[47].mxu0  ;;  %v4942_v63 = vpop.f32.mrb[62].mxu1 }
 0x333   :  { %v4944_v60 = vpop.f32.mrb[63].mxu1  ;;  %v4992_v62 = vpop.permute.xlu1 %2620 }
 0x335   :  { %v1318_v0 = vpop.f32.mrb[48].mxu0 }
 0x336   :  { %v4946_v1 = vadd.f32 %v1703_v5, %v1318_v0  ;;  %v1320_v2 = vpop.f32.mrb[49].mxu0  ;;  %v4948_v6 = vpop.f32.mrb[64].mxu1 }
 0x337   :  { %v4950_v3 = vpop.f32.mrb[65].mxu1  ;;  %v4996_v2 = vpop.permute.xlu0 %2615 }
 0x339   :  { %v1323_v12 = vpop.f32.mrb[50].mxu0 }
 0x33a   :  { %v4954_v13 = vadd.f32 %v3638_v41, %v1323_v12  ;;  %v1325_v7 = vpop.f32.mrb[51].mxu0  ;;  %v4956_v8 = vpop.f32.mrb[66].mxu1 }
 0x33b   :  { %v4960_v37 = vpop.f32.mrb[67].mxu1 }
 0x33d   :  { %v1328_v43 = vpop.f32.mrb[52].mxu0 }
 0x33e   :  { %v4962_v5 = vadd.f32 %v1713_v19, %v1328_v43  ;;  %v1330_v44 = vpop.f32.mrb[53].mxu0  ;;  %v4964_v45 = vpop.f32.mrb[68].mxu1 }
 0x33f   :  { %v4968_v46 = vpop.f32.mrb[69].mxu1 }
 0x341   :  { %v1333_v41 = vpop.f32.mrb[54].mxu0 }
 0x342   :  { %v4972_v22 = vadd.f32 %v3641_v48, %v1333_v41  ;;  %v1335_v14 = vpop.f32.mrb[55].mxu0  ;;  %v4974_v49 = vpop.f32.mrb[70].mxu1 }
 0x343   :  { %v4976_v26 = vpop.f32.mrb[71].mxu1  ;;  %v5004_v41 = vpop.permute.xlu1 %2630 }
 0x345   :  { %v1338_v19 = vpop.f32.mrb[56].mxu0 }
 0x346   :  { %v4980_v21 = vadd.f32 %v1723_v16, %v1338_v19  ;;  %v1340_v28 = vpop.f32.mrb[57].mxu0  ;;  %v4982_v30 = vpop.f32.mrb[72].mxu1 }
 0x347   :  { %v4986_v51 = vpop.f32.mrb[73].mxu1 }
 0x348   :  { %5581 = vst [vmem:[#allocation6_spill] sm:$0xff] %v4980_v21 }
 0x349   :  { %v1343_v54 = vpop.f32.mrb[58].mxu0 }
 0x34a   :  { %v4988_v48 = vadd.f32 %v3644_v10, %v1343_v54  ;;  %v1345_v56 = vpop.f32.mrb[59].mxu0  ;;  %v4990_v59 = vpop.f32.mrb[74].mxu1 }
 0x34b   :  { %5583 = vst [vmem:[#allocation8_spill] sm:$0xff] %v4990_v59  ;;  %v4994_v0 = vpop.f32.mrb[75].mxu1  ;;  %v5011_v54 = vpop.permute.xlu0 %2625 }
 0x34c   :  { %5582 = vst [vmem:[#allocation7_spill] sm:$0xff] %v4988_v48  ;;  %5584 = vst [vmem:[#allocation9_spill] sm:$0xff] %v4994_v0 }
 0x34d   :  { %v1348_v16 = vpop.f32.mrb[60].mxu0 }
 0x34e   :  { %v4998_v12 = vadd.f32 %v1733_v27, %v1348_v16  ;;  %v1350_v7 = vpop.f32.mrb[61].mxu0  ;;  %v5000_v43 = vpop.f32.mrb[76].mxu1 }
 0x34f   :  { %5586 = vst [vmem:[#allocation11_spill] sm:$0xff] %v5000_v43  ;;  %v5002_v44 = vpop.f32.mrb[77].mxu1 }
 0x350   :  { %5585 = vst [vmem:[#allocation10_spill] sm:$0xff] %v4998_v12  ;;  %5587 = vst [vmem:[#allocation12_spill] sm:$0xff] %v5002_v44  ;;  %v5020_v44 = vpop.permute.xlu1 %2640 }
 0x351   :  { %v1353_v10 = vpop.f32.mrb[62].mxu0 }
 0x352   :  { %v5007_v14 = vadd.f32 %v4919_v24, %v1353_v10  ;;  %v1355_v19 = vpop.f32.mrb[63].mxu0  ;;  %v5009_v28 = vpop.f32.mrb[78].mxu1 }
 0x353   :  { %5589 = vst [vmem:[#allocation14_spill] sm:$0xff] %v5009_v28  ;;  %v5013_v56 = vpop.f32.mrb[79].mxu1  ;;  %v5024_v24 = vpop.permute.xlu0 %2635 }
 0x354   :  { %5588 = vst [vmem:[#allocation13_spill] sm:$0xff] %v5007_v14  ;;  %5590 = vst [vmem:[#allocation15_spill] sm:$0xff] %v5013_v56 }
 0x355   :  { %v1358_v27 = vpop.f32.mrb[64].mxu0 }
 0x356   :  { %v5016_v16 = vadd.f32 %v4925_v32, %v1358_v27  ;;  %v1360_v7 = vpop.f32.mrb[65].mxu0  ;;  %v5018_v43 = vpop.f32.mrb[80].mxu1 }
 0x357   :  { %5592 = vst [vmem:[#allocation17_spill] sm:$0xff] %v5018_v43  ;;  %v5022_v12 = vpop.f32.mrb[81].mxu1  ;;  %v5033_v32 = vpop.permute.xlu1 %2650 }
 0x358   :  { %5591 = vst [vmem:[#allocation16_spill] sm:$0xff] %v5016_v16  ;;  %5593 = vst [vmem:[#allocation18_spill] sm:$0xff] %v5022_v12  ;;  %v5040_v12 = vpop.permute.xlu0 %2645 }
 0x359   :  { %v1363_v10 = vpop.f32.mrb[66].mxu0 }
 0x35a   :  { %v5027_v19 = vadd.f32 %v4923_v31, %v1363_v10  ;;  %v1365_v28 = vpop.f32.mrb[67].mxu0  ;;  %v5029_v14 = vpop.f32.mrb[82].mxu1 }
 0x35b   :  { %5595 = vst [vmem:[#allocation20_spill] sm:$0xff] %v5029_v14  ;;  %v5031_v56 = vpop.f32.mrb[83].mxu1 }
 0x35c   :  { %5594 = vst [vmem:[#allocation19_spill] sm:$0xff] %v5027_v19  ;;  %5596 = vst [vmem:[#allocation21_spill] sm:$0xff] %v5031_v56  ;;  %v5049_v56 = vpop.permute.xlu1 %2660 }
 0x35d   :  { %v1368_v27 = vpop.f32.mrb[68].mxu0 }
 0x35e   :  { %v5036_v7 = vadd.f32 %v4932_v52, %v1368_v27  ;;  %v1370_v43 = vpop.f32.mrb[69].mxu0  ;;  %v5038_v16 = vpop.f32.mrb[84].mxu1 }
 0x35f   :  { %5598 = vst [vmem:[#allocation23_spill] sm:$0xff] %v5038_v16  ;;  %v5042_v59 = vpop.f32.mrb[85].mxu1  ;;  %v5053_v52 = vpop.permute.xlu0 %2655 }
 0x360   :  { %5597 = vst [vmem:[#allocation22_spill] sm:$0xff] %v5036_v7  ;;  %5599 = vst [vmem:[#allocation24_spill] sm:$0xff] %v5042_v59 }
 0x361   :  { %v1373_v31 = vpop.f32.mrb[70].mxu0 }
 0x362   :  { %v5045_v28 = vadd.f32 %v4930_v53, %v1373_v31  ;;  %v1375_v10 = vpop.f32.mrb[71].mxu0  ;;  %v5047_v14 = vpop.f32.mrb[86].mxu1 }
 0x363   :  { %5601 = vst [vmem:[#allocation26_spill] sm:$0xff] %v5047_v14  ;;  %v5051_v19 = vpop.f32.mrb[87].mxu1  ;;  %v5062_v53 = vpop.permute.xlu1 %2670 }
 0x364   :  { %5600 = vst [vmem:[#allocation25_spill] sm:$0xff] %v5045_v28  ;;  %5602 = vst [vmem:[#allocation27_spill] sm:$0xff] %v5051_v19  ;;  %v5069_v19 = vpop.permute.xlu0 %2665 }
 0x365   :  { %v1378_v43 = vpop.f32.mrb[72].mxu0 }
 0x366   :  { %v5056_v27 = vadd.f32 %v4938_v58, %v1378_v43  ;;  %v1380_v16 = vpop.f32.mrb[73].mxu0  ;;  %v5058_v7 = vpop.f32.mrb[88].mxu1 }
 0x367   :  { %5604 = vst [vmem:[#allocation29_spill] sm:$0xff] %v5058_v7  ;;  %v5060_v59 = vpop.f32.mrb[89].mxu1 }
 0x368   :  { %5603 = vst [vmem:[#allocation28_spill] sm:$0xff] %v5056_v27  ;;  %5605 = vst [vmem:[#allocation30_spill] sm:$0xff] %v5060_v59  ;;  %v5078_v59 = vpop.permute.xlu1 %2680 }
 0x369   :  { %v1383_v31 = vpop.f32.mrb[74].mxu0 }
 0x36a   :  { %v5065_v10 = vadd.f32 %v4936_v57, %v1383_v31  ;;  %v1385_v14 = vpop.f32.mrb[75].mxu0  ;;  %v5067_v28 = vpop.f32.mrb[90].mxu1 }
 0x36b   :  { %5607 = vst [vmem:[#allocation32_spill] sm:$0xff] %v5067_v28  ;;  %v5071_v21 = vpop.f32.mrb[91].mxu1  ;;  %v5082_v57 = vpop.permute.xlu0 %2675 }
 0x36c   :  { %5606 = vst [vmem:[#allocation31_spill] sm:$0xff] %v5065_v10  ;;  %5608 = vst [vmem:[#allocation33_spill] sm:$0xff] %v5071_v21 }
 0x36d   :  { %v1388_v58 = vpop.f32.mrb[76].mxu0 }
 0x36e   :  { %v5074_v16 = vadd.f32 %v4944_v60, %v1388_v58  ;;  %v1390_v43 = vpop.f32.mrb[77].mxu0  ;;  %v5076_v7 = vpop.f32.mrb[92].mxu1 }
 0x36f   :  { %5610 = vst [vmem:[#allocation35_spill] sm:$0xff] %v5076_v7  ;;  %v5080_v27 = vpop.f32.mrb[93].mxu1  ;;  %v5091_v60 = vpop.permute.xlu1 %2690 }
 0x370   :  { %5609 = vst [vmem:[#allocation34_spill] sm:$0xff] %v5074_v16  ;;  %5611 = vst [vmem:[#allocation36_spill] sm:$0xff] %v5080_v27  ;;  %v5096_v27 = vpop.permute.xlu0 %2685 }
 0x371   :  { %v1393_v14 = vpop.f32.mrb[78].mxu0 }
 0x372   :  { %v5085_v31 = vadd.f32 %v4942_v63, %v1393_v14  ;;  %v1395_v28 = vpop.f32.mrb[79].mxu0  ;;  %v5087_v10 = vpop.f32.mrb[94].mxu1 }
 0x373   :  { %5613 = vst [vmem:[#allocation38_spill] sm:$0xff] %v5087_v10  ;;  %v5089_v21 = vpop.f32.mrb[95].mxu1 }
 0x374   :  { %5612 = vst [vmem:[#allocation37_spill] sm:$0xff] %v5085_v31  ;;  %5614 = vst [vmem:[#allocation39_spill] sm:$0xff] %v5089_v21 }
 0x375   :  { %v1398_v58 = vpop.f32.mrb[80].mxu0 }
 0x376   :  { %v5094_v43 = vadd.f32 %v4950_v3, %v1398_v58  ;;  %v1400_v7 = vpop.f32.mrb[81].mxu0  ;;  %v3726_v16 = vpop.f32.mrb[96].mxu1 }
 0x377   :  { %v2206_v48 = vadd.f32 %v3726_v16, %v4822_v39  ;;  %v2200_v0 = vpop.f32.mrb[97].mxu1  ;;  %v5105_v58 = vpop.permute.xlu1 %2700 }
 0x378   :  { %v2201_v63 = vadd.f32 %v2200_v0, %v4813_v11 }
 0x379   :  { %v2904_v28 = vadd.f32 %v4970_v47, %v2206_v48  ;;  %v1403_v14 = vpop.f32.mrb[82].mxu0 }
 0x37a   :  { %v2903_v10 = vadd.f32 %v4958_v38, %v2201_v63  ;;  %v5103_v21 = vadd.f32 %v4948_v6, %v1403_v14  ;;  %v1405_v31 = vpop.f32.mrb[83].mxu0  ;;  %v3729_v3 = vpop.f32.mrb[98].mxu1 }
 0x37b   :  { %2968 = vst.msk [vmem:[%s5580_s5 + $0x8] sm:$0xff] %vm180_vm1, %v2904_v28  ;;  %v2216_v39 = vadd.f32 %v3729_v3, %v4842_v23  ;;  %v2210_v11 = vpop.f32.mrb[99].mxu1  ;;  %v5117_v38 = vpop.permute.xlu0 %2695 }
 0x37c   :  { %2967 = vst.msk [vmem:[%s5580_s5] sm:$0xff] %vm180_vm1, %v2903_v10  ;;  %v2211_v6 = vadd.f32 %v2210_v11, %v4832_v15 }
 0x37d   :  { %v2906_v47 = vadd.f32 %v4966_v42, %v2216_v39  ;;  %v1408_v48 = vpop.f32.mrb[84].mxu0  ;;  %v5134_v42 = vpop.permute.xlu1 %2710 }
 0x37e   :  { %v2905_v0 = vadd.f32 %v4952_v9, %v2211_v6  ;;  %v5122_v7 = vadd.f32 %v4960_v37, %v1408_v48  ;;  %v1410_v16 = vpop.f32.mrb[85].mxu0  ;;  %v3732_v23 = vpop.f32.mrb[100].mxu1 }
 0x37f   :  { %2970 = vst.msk [vmem:[%s5580_s5 + $0x18] sm:$0xff] %vm180_vm1, %v2906_v47  ;;  %v2226_v10 = vadd.f32 %v3732_v23, %v4862_v35  ;;  %v2220_v15 = vpop.f32.mrb[101].mxu1  ;;  %v5141_v3 = vpop.permute.xlu0 %2705 }
 0x380   :  { %2969 = vst.msk [vmem:[%s5580_s5 + $0x10] sm:$0xff] %vm180_vm1, %v2905_v0  ;;  %v2221_v9 = vadd.f32 %v2220_v15, %v4852_v25 }
 0x381   :  { %v2908_v37 = vadd.f32 %v4978_v17, %v2226_v10  ;;  %v1413_v31 = vpop.f32.mrb[86].mxu0  ;;  %v5158_v0 = vpop.permute.xlu1 %2720 }
 0x382   :  { %v2907_v63 = vadd.f32 %v4984_v33, %v2221_v9  ;;  %v5139_v28 = vadd.f32 %v4956_v8, %v1413_v31  ;;  %v1415_v14 = vpop.f32.mrb[87].mxu0  ;;  %v3735_v35 = vpop.f32.mrb[102].mxu1 }
 0x383   :  { %2972 = vst.msk [vmem:[%s5580_s5 + $0x28] sm:$0xff] %vm180_vm1, %v2908_v37  ;;  %v2236_v25 = vadd.f32 %v3735_v35, %v4886_v4  ;;  %v2230_v39 = vpop.f32.mrb[103].mxu1 }
 0x384   :  { %2971 = vst.msk [vmem:[%s5580_s5 + $0x20] sm:$0xff] %vm180_vm1, %v2907_v63  ;;  %v2231_v8 = vadd.f32 %v2230_v39, %v4874_v36 }
 0x385   :  { %v2910_v17 = vadd.f32 %v4992_v62, %v2236_v25  ;;  %v1418_v33 = vpop.f32.mrb[88].mxu0  ;;  %v5170_v62 = vpop.permute.xlu0 %2715 }
 0x386   :  { %v2909_v11 = vadd.f32 %v4996_v2, %v2231_v8  ;;  %v5156_v6 = vadd.f32 %v4968_v46, %v1418_v33  ;;  %v1420_v47 = vpop.f32.mrb[89].mxu0  ;;  %v3738_v48 = vpop.f32.mrb[104].mxu1 }
 0x387   :  { %2974 = vst.msk [vmem:[%s5580_s5 + $0x38] sm:$0xff] %vm180_vm1, %v2910_v17  ;;  %v2246_v4 = vadd.f32 %v3738_v48, %v4906_v18  ;;  %v2240_v36 = vpop.f32.mrb[105].mxu1 }
 0x388   :  { %2973 = vst.msk [vmem:[%s5580_s5 + $0x30] sm:$0xff] %vm180_vm1, %v2909_v11  ;;  %v2241_v46 = vadd.f32 %v2240_v36, %v4896_v40 }
 0x389   :  { %v2912_v2 = vadd.f32 %v5004_v41, %v2246_v4  ;;  %v1423_v16 = vpop.f32.mrb[90].mxu0  ;;  %v5194_v35 = vpop.permute.xlu0 %2725 }
 0x38a   :  { %v2911_v23 = vadd.f32 %v5011_v54, %v2241_v46  ;;  %v5175_v10 = vadd.f32 %v4964_v45, %v1423_v16  ;;  %v1425_v15 = vpop.f32.mrb[91].mxu0  ;;  %v3741_v18 = vpop.f32.mrb[106].mxu1 }
 0x38b   :  { %2976 = vst.msk [vmem:[%s5580_s5 + $0x48] sm:$0xff] %vm180_vm1, %v2912_v2  ;;  %v2256_v9 = vadd.f32 %v3741_v18, %v4917_v20  ;;  %v2250_v40 = vpop.f32.mrb[107].mxu1  ;;  %v5187_v54 = vpop.permute.xlu1 %2730 }
 0x38c   :  { %2975 = vst.msk [vmem:[%s5580_s5 + $0x40] sm:$0xff] %vm180_vm1, %v2911_v23  ;;  %v2251_v41 = vadd.f32 %v2250_v40, %v4913_v50 }
 0x38d   :  { %v2914_v45 = vadd.f32 %v5020_v44, %v2256_v9  ;;  %v1428_v37 = vpop.f32.mrb[92].mxu0 }
 0x38e   :  { %v2913_v31 = vadd.f32 %v5024_v24, %v2251_v41  ;;  %v5192_v63 = vadd.f32 %v4976_v26, %v1428_v37  ;;  %v1430_v14 = vpop.f32.mrb[93].mxu0  ;;  %v3744_v20 = vpop.f32.mrb[108].mxu1  ;;  %v5615_v41 = vld [vmem:[#allocation9_spill] sm:$0xff] }
 0x38f   :  { %2978 = vst.msk [vmem:[%s5580_s5 + $0x58] sm:$0xff] %vm180_vm1, %v2914_v45  ;;  %v2266_v50 = vadd.f32 %v3744_v20, %v4928_v34  ;;  %v2260_v25 = vpop.f32.mrb[109].mxu1  ;;  %v5211_v11 = vpop.permute.xlu1 %2740 }
 0x390   :  { %2977 = vst.msk [vmem:[%s5580_s5 + $0x50] sm:$0xff] %vm180_vm1, %v2913_v31  ;;  %v2261_v26 = vadd.f32 %v2260_v25, %v4921_v29 }
 0x391   :  { %v2916_v44 = vadd.f32 %v5033_v32, %v2266_v50  ;;  %v1433_v24 = vpop.f32.mrb[94].mxu0 }
 0x392   :  { %v2915_v39 = vadd.f32 %v5040_v12, %v2261_v26  ;;  %v5209_v8 = vadd.f32 %v4974_v49, %v1433_v24  ;;  %v1435_v17 = vpop.f32.mrb[95].mxu0  ;;  %v3747_v33 = vpop.f32.mrb[110].mxu1  ;;  %v5618_v24 = vld [vmem:[#allocation8_spill] sm:$0xff] }
 0x393   :  { %2980 = vst.msk [vmem:[%s5580_s5 + $0x68] sm:$0xff] %vm180_vm1, %v2916_v44  ;;  %v2276_v34 = vadd.f32 %v3747_v33, %v4940_v61  ;;  %v2270_v29 = vpop.f32.mrb[111].mxu1  ;;  %v5223_v12 = vpop.permute.xlu0 %2735 }
 0x394   :  { %2979 = vst.msk [vmem:[%s5580_s5 + $0x60] sm:$0xff] %vm180_vm1, %v2915_v39  ;;  %v2271_v49 = vadd.f32 %v2270_v29, %v4934_v55 }
 0x395   :  { %v2918_v32 = vadd.f32 %v5049_v56, %v2276_v34  ;;  %v1438_v47 = vpop.f32.mrb[96].mxu0  ;;  %v5619_v34 = vld [vmem:[#allocation13_spill] sm:$0xff] }
 0x396   :  { %v2917_v48 = vadd.f32 %v5053_v52, %v2271_v49  ;;  %v5228_v4 = vadd.f32 %v4986_v51, %v1438_v47  ;;  %v1440_v36 = vpop.f32.mrb[97].mxu0  ;;  %v3750_v61 = vpop.f32.mrb[112].mxu1 }
 0x397   :  { %2982 = vst.msk [vmem:[%s5580_s5 + $0x78] sm:$0xff] %vm180_vm1, %v2918_v32  ;;  %v2286_v46 = vadd.f32 %v3750_v61, %v4954_v13  ;;  %v2280_v55 = vpop.f32.mrb[113].mxu1  ;;  %v5240_v52 = vpop.permute.xlu1 %2750  ;;  %v5621_v61 = vld [vmem:[#allocation12_spill] sm:$0xff] }
 0x398   :  { %2981 = vst.msk [vmem:[%s5580_s5 + $0x70] sm:$0xff] %vm180_vm1, %v2917_v48  ;;  %v2281_v56 = vadd.f32 %v2280_v55, %v4946_v1  ;;  %v5247_v18 = vpop.permute.xlu0 %2745 }
 0x399   :  { %v2920_v51 = vadd.f32 %v5062_v53, %v2286_v46  ;;  %v1443_v2 = vpop.f32.mrb[98].mxu0 }
 0x39a   :  { %v2919_v16 = vadd.f32 %v5069_v19, %v2281_v56  ;;  %v5245_v23 = vadd.f32 %v4982_v30, %v1443_v2  ;;  %v1445_v15 = vpop.f32.mrb[99].mxu0  ;;  %v3753_v13 = vpop.f32.mrb[114].mxu1  ;;  %v5622_v2 = vld [vmem:[#allocation19_spill] sm:$0xff] }
 0x39b   :  { %2984 = vst.msk [vmem:[%s5580_s5 + $0x88] sm:$0xff] %vm180_vm1, %v2920_v51  ;;  %v2296_v1 = vadd.f32 %v3753_v13, %v4972_v22  ;;  %v2290_v9 = vpop.f32.mrb[115].mxu1  ;;  %v5264_v14 = vpop.permute.xlu1 %2760  ;;  %v5616_v22 = vld [vmem:[#allocation7_spill] sm:$0xff] }
 0x39c   :  { %2983 = vst.msk [vmem:[%s5580_s5 + $0x80] sm:$0xff] %vm180_vm1, %v2919_v16  ;;  %v2291_v30 = vadd.f32 %v2290_v9, %v4962_v5  ;;  %v5276_v50 = vpop.permute.xlu0 %2755 }
 0x39d   :  { %v2922_v19 = vadd.f32 %v5078_v59, %v2296_v1  ;;  %v1448_v53 = vpop.f32.mrb[100].mxu0  ;;  %v5617_v59 = vld [vmem:[#allocation6_spill] sm:$0xff] }
 0x39e   :  { %v2921_v40 = vadd.f32 %v5082_v57, %v2291_v30  ;;  %v5262_v45 = vadd.f32 %v5615_v41, %v1448_v53  ;;  %v1450_v37 = vpop.f32.mrb[101].mxu0  ;;  %v3756_v31 = vpop.f32.mrb[116].mxu1  ;;  %v5624_v30 = vld [vmem:[#allocation11_spill] sm:$0xff] }
 0x39f   :  { %2986 = vst.msk [vmem:[%s5580_s5 + $0x98] sm:$0xff] %vm180_vm1, %v2922_v19  ;;  %v2306_v20 = vadd.f32 %v3756_v31, %v5616_v22  ;;  %v2300_v5 = vpop.f32.mrb[117].mxu1  ;;  %v5293_v32 = vpop.permute.xlu1 %2770  ;;  %v5625_v37 = vld [vmem:[#allocation25_spill] sm:$0xff] }
 0x3a0   :  { %2985 = vst.msk [vmem:[%s5580_s5 + $0x90] sm:$0xff] %vm180_vm1, %v2921_v40  ;;  %v2301_v57 = vadd.f32 %v2300_v5, %v5617_v59  ;;  %v5300_v51 = vpop.permute.xlu0 %2765 }
 0x3a1   :  { %v2924_v25 = vadd.f32 %v5091_v60, %v2306_v20  ;;  %v1453_v26 = vpop.f32.mrb[102].mxu0  ;;  %v5620_v60 = vld [vmem:[#allocation10_spill] sm:$0xff] }
 0x3a2   :  { %v2923_v44 = vadd.f32 %v5096_v27, %v2301_v57  ;;  %v5281_v39 = vadd.f32 %v5618_v24, %v1453_v26  ;;  %v1455_v17 = vpop.f32.mrb[103].mxu0  ;;  %v3759_v33 = vpop.f32.mrb[118].mxu1 }
 0x3a3   :  { %2988 = vst.msk [vmem:[%s5580_s5 + $0xa8] sm:$0xff] %vm180_vm1, %v2924_v25  ;;  %v2316_v29 = vadd.f32 %v3759_v33, %v5619_v34  ;;  %v2310_v49 = vpop.f32.mrb[119].mxu1  ;;  %v5317_v41 = vpop.permute.xlu1 %2780  ;;  %v5627_v25 = vld [vmem:[#allocation15_spill] sm:$0xff] }
 0x3a4   :  { %2987 = vst.msk [vmem:[%s5580_s5 + $0xa0] sm:$0xff] %vm180_vm1, %v2923_v44  ;;  %v2311_v27 = vadd.f32 %v2310_v49, %v5620_v60  ;;  %v5329_v20 = vpop.permute.xlu0 %2775  ;;  %v5628_v17 = vld [vmem:[#allocation31_spill] sm:$0xff] }
 0x3a5   :  { %v2926_v47 = vadd.f32 %v5105_v58, %v2316_v29  ;;  %v1458_v48 = vpop.f32.mrb[104].mxu0  ;;  %v5623_v58 = vld [vmem:[#allocation16_spill] sm:$0xff] }
 0x3a6   :  { %v2925_v36 = vadd.f32 %v5117_v38, %v2311_v27  ;;  %v5298_v46 = vadd.f32 %v5621_v61, %v1458_v48  ;;  %v1460_v55 = vpop.f32.mrb[105].mxu0  ;;  %v3762_v56 = vpop.f32.mrb[120].mxu1 }
 0x3a7   :  { %2990 = vst.msk [vmem:[%s5580_s5 + $0xb8] sm:$0xff] %vm180_vm1, %v2926_v47  ;;  %v2326_v16 = vadd.f32 %v3762_v56, %v5622_v2  ;;  %v2320_v15 = vpop.f32.mrb[121].mxu1  ;;  %v5346_v29 = vpop.permute.xlu1 %2790  ;;  %v5630_v47 = vld [vmem:[#allocation14_spill] sm:$0xff]  ;;  %v5631_v56 = vld [vmem:[#allocation37_spill] sm:$0xff] }
 0x3a8   :  { %2989 = vst.msk [vmem:[%s5580_s5 + $0xb0] sm:$0xff] %vm180_vm1, %v2925_v36  ;;  %v2321_v38 = vadd.f32 %v2320_v15, %v5623_v58  ;;  %v5353_v55 = vpop.permute.xlu0 %2785 }
 0x3a9   :  { %v2928_v13 = vadd.f32 %v5134_v42, %v2326_v16  ;;  %v1463_v1 = vpop.f32.mrb[106].mxu0  ;;  %v5626_v42 = vld [vmem:[#allocation22_spill] sm:$0xff] }
 0x3aa   :  { %v2927_v9 = vadd.f32 %v5141_v3, %v2321_v38  ;;  %v5315_v19 = vadd.f32 %v5624_v30, %v1463_v1  ;;  %v1465_v53 = vpop.f32.mrb[107].mxu0  ;;  %v3765_v40 = vpop.f32.mrb[122].mxu1 }
 0x3ab   :  { %2992 = vst.msk [vmem:[%s5580_s5 + $0xc8] sm:$0xff] %vm180_vm1, %v2928_v13  ;;  %v2336_v31 = vadd.f32 %v3765_v40, %v5625_v37  ;;  %v2330_v22 = vpop.f32.mrb[123].mxu1  ;;  %v5633_v13 = vld [vmem:[#allocation18_spill] sm:$0xff]  ;;  %v5370_v53 = vpop.permute.xlu1 %2800 }
 0x3ac   :  { %2991 = vst.msk [vmem:[%s5580_s5 + $0xc0] sm:$0xff] %vm180_vm1, %v2927_v9  ;;  %v2331_v3 = vadd.f32 %v2330_v22, %v5626_v42 }
 0x3ad   :  { %v2930_v5 = vadd.f32 %v5158_v0, %v2336_v31  ;;  %v1468_v59 = vpop.f32.mrb[108].mxu0  ;;  %v5629_v0 = vld [vmem:[#allocation28_spill] sm:$0xff] }
 0x3ae   :  { %v2929_v57 = vadd.f32 %v5170_v62, %v2331_v3  ;;  %v5334_v26 = vadd.f32 %v5627_v25, %v1468_v59  ;;  %v1470_v44 = vpop.f32.mrb[109].mxu0  ;;  %v3768_v24 = vpop.f32.mrb[124].mxu1  ;;  %v5634_v3 = vld [vmem:[#allocation17_spill] sm:$0xff] }
 0x3af   :  { %2994 = vst.msk [vmem:[%s5580_s5 + $0xd8] sm:$0xff] %vm180_vm1, %v2930_v5  ;;  %v2346_v33 = vadd.f32 %v3768_v24, %v5628_v17  ;;  %v2340_v34 = vpop.f32.mrb[125].mxu1  ;;  %v5635_v17 = vld [vmem:[#allocation21_spill] sm:$0xff] }
 0x3b0   :  { %2993 = vst.msk [vmem:[%s5580_s5 + $0xd0] sm:$0xff] %vm180_vm1, %v2929_v57  ;;  %v2341_v62 = vadd.f32 %v2340_v34, %v5629_v0 }
 0x3b1   :  { %v2932_v49 = vadd.f32 %v5187_v54, %v2346_v33  ;;  %v1473_v60 = vpop.f32.mrb[110].mxu0  ;;  %v5632_v54 = vld [vmem:[#allocation34_spill] sm:$0xff] }
 0x3b2   :  { %v2931_v27 = vadd.f32 %v5194_v35, %v2341_v62  ;;  %v5351_v48 = vadd.f32 %v5630_v47, %v1473_v60  ;;  %v1475_v36 = vpop.f32.mrb[111].mxu0  ;;  %v3771_v61 = vpop.f32.mrb[126].mxu1 }
 0x3b3   :  { %2996 = vst.msk [vmem:[%s5580_s5 + $0xe8] sm:$0xff] %vm180_vm1, %v2932_v49  ;;  %v2356_v2 = vadd.f32 %v3771_v61, %v5631_v56  ;;  %v2350_v16 = vpop.f32.mrb[127].mxu1 }
 0x3b4   :  { %2995 = vst.msk [vmem:[%s5580_s5 + $0xe0] sm:$0xff] %vm180_vm1, %v2931_v27  ;;  %v2351_v35 = vadd.f32 %v2350_v16, %v5632_v54  ;;  %v5636_v27 = vld [vmem:[#allocation20_spill] sm:$0xff] }
 0x3b5   :  { %v2934_v15 = vadd.f32 %v5211_v11, %v2356_v2  ;;  %v1478_v58 = vpop.f32.mrb[112].mxu0 }
 0x3b6   :  { %v2933_v38 = vadd.f32 %v5223_v12, %v2351_v35  ;;  %v5368_v1 = vadd.f32 %v5633_v13, %v1478_v58  ;;  %v1480_v9 = vpop.f32.mrb[113].mxu0  ;;  %v3774_v30 = vpop.f32.mrb[128].mxu1  ;;  %v5637_v35 = vld [vmem:[#allocation24_spill] sm:$0xff] }
 0x3b7   :  { %2998 = vst.msk [vmem:[%s5580_s5 + $0xf8] sm:$0xff] %vm180_vm1, %v2934_v15  ;;  %v2366_v40 = vadd.f32 %v3774_v30, %v5103_v21  ;;  %v2360_v37 = vpop.f32.mrb[129].mxu1  ;;  %v5382_v12 = vpop.permute.xlu0 %2795 }
 0x3b8   :  { %2997 = vst.msk [vmem:[%s5580_s5 + $0xf0] sm:$0xff] %vm180_vm1, %v2933_v38  ;;  %v2361_v11 = vadd.f32 %v2360_v37, %v5094_v43 }
 0x3b9   :  { %v2936_v31 = vadd.f32 %v5240_v52, %v2366_v40  ;;  %v1483_v22 = vpop.f32.mrb[114].mxu0  ;;  %v5638_v40 = vld [vmem:[#allocation23_spill] sm:$0xff] }
 0x3ba   :  { %v2935_v42 = vadd.f32 %v5247_v18, %v2361_v11  ;;  %v5387_v5 = vadd.f32 %v5634_v3, %v1483_v22  ;;  %v1485_v59 = vpop.f32.mrb[115].mxu0  ;;  %v3777_v21 = vpop.f32.mrb[130].mxu1 }
 0x3bb   :  { %3000 = vst.msk [vmem:[%s5580_s5 + $0x108] sm:$0xff] %vm180_vm1, %v2936_v31  ;;  %v2376_v57 = vadd.f32 %v3777_v21, %v5139_v28  ;;  %v2370_v43 = vpop.f32.mrb[131].mxu1  ;;  %v5399_v18 = vpop.permute.xlu1 %2810  ;;  %v5639_v59 = vld [vmem:[#allocation27_spill] sm:$0xff] }
 0x3bc   :  { %2999 = vst.msk [vmem:[%s5580_s5 + $0x100] sm:$0xff] %vm180_vm1, %v2935_v42  ;;  %v2371_v52 = vadd.f32 %v2370_v43, %v5122_v7  ;;  %v2806_v0 = vpop.permute.xlu0 %2805 }
 0x3bd   :  { %v2938_v25 = vadd.f32 %v5264_v14, %v2376_v57  ;;  %v1488_v44 = vpop.f32.mrb[116].mxu0 }
 0x3be   :  { %v2937_v24 = vadd.f32 %v5276_v50, %v2371_v52  ;;  %v5404_v33 = vadd.f32 %v5635_v17, %v1488_v44  ;;  %v1490_v34 = vpop.f32.mrb[117].mxu0  ;;  %v3780_v28 = vpop.f32.mrb[132].mxu1  ;;  %v5640_v17 = vld [vmem:[#allocation26_spill] sm:$0xff] }
 0x3bf   :  { %3002 = vst.msk [vmem:[%s5580_s5 + $0x118] sm:$0xff] %vm180_vm1, %v2938_v25  ;;  %v2386_v7 = vadd.f32 %v3780_v28, %v5175_v10  ;;  %v2380_v62 = vpop.f32.mrb[133].mxu1  ;;  %v2821_v56 = vpop.permute.xlu1 %2820 }
 0x3c0   :  { %3001 = vst.msk [vmem:[%s5580_s5 + $0x110] sm:$0xff] %vm180_vm1, %v2937_v24  ;;  %v2381_v14 = vadd.f32 %v2380_v62, %v5156_v6 }
 0x3c1   :  { %v2940_v50 = vadd.f32 %v5293_v32, %v2386_v7  ;;  %v1493_v49 = vpop.f32.mrb[118].mxu0  ;;  %v2816_v32 = vpop.permute.xlu0 %2815 }
 0x3c2   :  { %v2939_v60 = vadd.f32 %v5300_v51, %v2381_v14  ;;  %v5419_v47 = vadd.f32 %v5636_v27, %v1493_v49  ;;  %v1495_v36 = vpop.f32.mrb[119].mxu0  ;;  %v3783_v61 = vpop.f32.mrb[134].mxu1  ;;  %v5641_v49 = vld [vmem:[#allocation30_spill] sm:$0xff] }
 0x3c3   :  { %3004 = vst.msk [vmem:[%s5580_s5 + $0x128] sm:$0xff] %vm180_vm1, %v2940_v50  ;;  %v2396_v10 = vadd.f32 %v3783_v61, %v5209_v8  ;;  %v2390_v2 = vpop.f32.mrb[135].mxu1 }
 0x3c4   :  { %3003 = vst.msk [vmem:[%s5580_s5 + $0x120] sm:$0xff] %vm180_vm1, %v2939_v60  ;;  %v2391_v6 = vadd.f32 %v2390_v2, %v5192_v63 }
 0x3c5   :  { %v2942_v51 = vadd.f32 %v5317_v41, %v2396_v10  ;;  %v1498_v16 = vpop.f32.mrb[120].mxu0  ;;  %v2831_v41 = vpop.permute.xlu1 %2830 }
 0x3c6   :  { %v2941_v54 = vadd.f32 %v5329_v20, %v2391_v6  ;;  %v5434_v15 = vadd.f32 %v5637_v35, %v1498_v16  ;;  %v1500_v58 = vpop.f32.mrb[121].mxu0  ;;  %v3786_v38 = vpop.f32.mrb[136].mxu1 }
 0x3c7   :  { %3006 = vst.msk [vmem:[%s5580_s5 + $0x138] sm:$0xff] %vm180_vm1, %v2942_v51  ;;  %v2406_v8 = vadd.f32 %v3786_v38, %v5245_v23  ;;  %v2400_v13 = vpop.f32.mrb[137].mxu1  ;;  %v2826_v23 = vpop.permute.xlu0 %2825 }
 0x3c8   :  { %3005 = vst.msk [vmem:[%s5580_s5 + $0x130] sm:$0xff] %vm180_vm1, %v2941_v54  ;;  %v2401_v63 = vadd.f32 %v2400_v13, %v5228_v4 }
 0x3c9   :  { %v2944_v20 = vadd.f32 %v5346_v29, %v2406_v8  ;;  %v1503_v9 = vpop.f32.mrb[122].mxu0  ;;  %v2841_v52 = vpop.permute.xlu1 %2840 }
 0x3ca   :  { %v2943_v30 = vadd.f32 %v5353_v55, %v2401_v63  ;;  %v5449_v37 = vadd.f32 %v5638_v40, %v1503_v9  ;;  %v1505_v11 = vpop.f32.mrb[123].mxu0  ;;  %v3789_v31 = vpop.f32.mrb[138].mxu1 }
 0x3cb   :  { %3008 = vst.msk [vmem:[%s5580_s5 + $0x148] sm:$0xff] %vm180_vm1, %v2944_v20  ;;  %v2416_v22 = vadd.f32 %v3789_v31, %v5281_v39  ;;  %v2410_v4 = vpop.f32.mrb[139].mxu1 }
 0x3cc   :  { %3007 = vst.msk [vmem:[%s5580_s5 + $0x140] sm:$0xff] %vm180_vm1, %v2943_v30  ;;  %v2411_v29 = vadd.f32 %v2410_v4, %v5262_v45  ;;  %v5644_v4 = vld [vmem:[#allocation32_spill] sm:$0xff] }
 0x3cd   :  { %v2946_v55 = vadd.f32 %v5370_v53, %v2416_v22  ;;  %v1508_v42 = vpop.f32.mrb[124].mxu0  ;;  %v2836_v53 = vpop.permute.xlu0 %2835 }
 0x3ce   :  { %v2945_v3 = vadd.f32 %v5382_v12, %v2411_v29  ;;  %v5464_v21 = vadd.f32 %v5639_v59, %v1508_v42  ;;  %v1510_v57 = vpop.f32.mrb[125].mxu0  ;;  %v3792_v43 = vpop.f32.mrb[140].mxu1 }
 0x3cf   :  { %3010 = vst.msk [vmem:[%s5580_s5 + $0x158] sm:$0xff] %vm180_vm1, %v2946_v55  ;;  %v2426_v39 = vadd.f32 %v3792_v43, %v5315_v19  ;;  %v2420_v25 = vpop.f32.mrb[141].mxu1 }
 0x3d0   :  { %3009 = vst.msk [vmem:[%s5580_s5 + $0x150] sm:$0xff] %vm180_vm1, %v2945_v3  ;;  %v2421_v45 = vadd.f32 %v2420_v25, %v5298_v46 }
 0x3d1   :  { %v2948_v12 = vadd.f32 %v5399_v18, %v2426_v39  ;;  %v1513_v44 = vpop.f32.mrb[126].mxu0  ;;  %v2851_v18 = vpop.permute.xlu1 %2850  ;;  %v5645_v39 = vld [vmem:[#allocation36_spill] sm:$0xff] }
 0x3d2   :  { %v2947_v24 = vadd.f32 %v2806_v0, %v2421_v45  ;;  %v1899_v34 = vadd.f32 %v5640_v17, %v1513_v44  ;;  %v1515_v28 = vpop.f32.mrb[127].mxu0  ;;  %v3795_v7 = vpop.f32.mrb[142].mxu1 }
 0x3d3   :  { %3012 = vst.msk [vmem:[%s5580_s5 + $0x168] sm:$0xff] %vm180_vm1, %v2948_v12  ;;  %v2436_v19 = vadd.f32 %v3795_v7, %v5351_v48  ;;  %v2430_v62 = vpop.f32.mrb[143].mxu1  ;;  %v2846_v61 = vpop.permute.xlu0 %2845 }
 0x3d4   :  { %3011 = vst.msk [vmem:[%s5580_s5 + $0x160] sm:$0xff] %vm180_vm1, %v2947_v24  ;;  %v2431_v46 = vadd.f32 %v2430_v62, %v5334_v26 }
 0x3d5   :  { %v2950_v0 = vadd.f32 %v2821_v56, %v2436_v19  ;;  %v1518_v14 = vpop.f32.mrb[128].mxu0  ;;  %v2861_v35 = vpop.permute.xlu1 %2860  ;;  %v5646_v19 = vld [vmem:[#allocation35_spill] sm:$0xff] }
 0x3d6   :  { %v2949_v50 = vadd.f32 %v2816_v32, %v2431_v46  ;;  %v1904_v60 = vadd.f32 %v5641_v49, %v1518_v14  ;;  %v1520_v27 = vpop.f32.mrb[129].mxu0  ;;  %v3798_v36 = vpop.f32.mrb[144].mxu1  ;;  %v5642_v32 = vld [vmem:[#allocation29_spill] sm:$0xff] }
 0x3d7   :  { %3014 = vst.msk [vmem:[%s5580_s5 + $0x178] sm:$0xff] %vm180_vm1, %v2950_v0  ;;  %v2446_v48 = vadd.f32 %v3798_v36, %v5387_v5  ;;  %v2440_v10 = vpop.f32.mrb[145].mxu1  ;;  %v2856_v38 = vpop.permute.xlu0 %2855 }
 0x3d8   :  { %3013 = vst.msk [vmem:[%s5580_s5 + $0x170] sm:$0xff] %vm180_vm1, %v2949_v50  ;;  %v2441_v26 = vadd.f32 %v2440_v10, %v5368_v1 }
 0x3d9   :  { %v2952_v56 = vadd.f32 %v2831_v41, %v2446_v48  ;;  %v1523_v2 = vpop.f32.mrb[130].mxu0  ;;  %v5643_v41 = vld [vmem:[#allocation33_spill] sm:$0xff]  ;;  %v2871_v11 = vpop.permute.xlu1 %2870 }
 0x3da   :  { %v2951_v6 = vadd.f32 %v2826_v23, %v2441_v26  ;;  %v1909_v51 = vadd.f32 %v5642_v32, %v1523_v2  ;;  %v1525_v16 = vpop.f32.mrb[131].mxu0  ;;  %v3801_v54 = vpop.f32.mrb[146].mxu1 }
 0x3db   :  { %3016 = vst.msk [vmem:[%s5580_s5 + $0x188] sm:$0xff] %vm180_vm1, %v2952_v56  ;;  %v2456_v5 = vadd.f32 %v3801_v54, %v5419_v47  ;;  %v2450_v58 = vpop.f32.mrb[147].mxu1  ;;  %v2866_v3 = vpop.permute.xlu0 %2865 }
 0x3dc   :  { %3015 = vst.msk [vmem:[%s5580_s5 + $0x180] sm:$0xff] %vm180_vm1, %v2951_v6  ;;  %v2451_v1 = vadd.f32 %v2450_v58, %v5404_v33 }
 0x3dd   :  { %v2954_v8 = vadd.f32 %v2841_v52, %v2456_v5  ;;  %v1528_v13 = vpop.f32.mrb[132].mxu0  ;;  %v2881_v12 = vpop.permute.xlu1 %2880 }
 0x3de   :  { %v2953_v63 = vadd.f32 %v2836_v53, %v2451_v1  ;;  %v1914_v20 = vadd.f32 %v5643_v41, %v1528_v13  ;;  %v1530_v9 = vpop.f32.mrb[133].mxu0  ;;  %v3804_v30 = vpop.f32.mrb[148].mxu1 }
 0x3df   :  { %3018 = vst.msk [vmem:[%s5580_s5 + $0x198] sm:$0xff] %vm180_vm1, %v2954_v8  ;;  %v2466_v47 = vadd.f32 %v3804_v30, %v5449_v37  ;;  %v2460_v40 = vpop.f32.mrb[149].mxu1  ;;  %v2876_v17 = vpop.permute.xlu0 %2875 }
 0x3e0   :  { %3017 = vst.msk [vmem:[%s5580_s5 + $0x190] sm:$0xff] %vm180_vm1, %v2953_v63  ;;  %v2461_v33 = vadd.f32 %v2460_v40, %v5434_v15 }
 0x3e1   :  { %v2956_v31 = vadd.f32 %v2851_v18, %v2466_v47  ;;  %v1533_v23 = vpop.f32.mrb[134].mxu0  ;;  %v2891_v49 = vpop.permute.xlu1 %2890 }
 0x3e2   :  { %v2955_v22 = vadd.f32 %v2846_v61, %v2461_v33  ;;  %v1919_v29 = vadd.f32 %v5644_v4, %v1533_v23  ;;  %v1535_v55 = vpop.f32.mrb[135].mxu0  ;;  %v3807_v42 = vpop.f32.mrb[150].mxu1  ;;  %v5647_v61 = vld [vmem:[#allocation39_spill] sm:$0xff] }
 0x3e3   :  { %3020 = vst.msk [vmem:[%s5580_s5 + $0x1a8] sm:$0xff] %vm180_vm1, %v2956_v31  ;;  %v2476_v37 = vadd.f32 %v3807_v42, %v1899_v34  ;;  %v2470_v59 = vpop.f32.mrb[151].mxu1  ;;  %v2886_v56 = vpop.permute.xlu0 %2885 }
 0x3e4   :  { %3019 = vst.msk [vmem:[%s5580_s5 + $0x1a0] sm:$0xff] %vm180_vm1, %v2955_v22  ;;  %v2471_v15 = vadd.f32 %v2470_v59, %v5464_v21 }
 0x3e5   :  { %v2958_v57 = vadd.f32 %v2861_v35, %v2476_v37  ;;  %v1538_v43 = vpop.f32.mrb[136].mxu0  ;;  %v5648_v35 = vld [vmem:[#allocation38_spill] sm:$0xff]  ;;  %v2901_v63 = vpop.permute.xlu1 %2900 }
 0x3e6   :  { %v2957_v52 = vadd.f32 %v2856_v38, %v2471_v15  ;;  %v1924_v25 = vadd.f32 %v5645_v39, %v1538_v43  ;;  %v1540_v45 = vpop.f32.mrb[137].mxu0  ;;  %v3810_v53 = vpop.f32.mrb[152].mxu1 }
 0x3e7   :  { %3022 = vst.msk [vmem:[%s5580_s5 + $0x1b8] sm:$0xff] %vm180_vm1, %v2958_v57  ;;  %v2486_v44 = vadd.f32 %v3810_v53, %v1909_v51  ;;  %v2480_v24 = vpop.f32.mrb[153].mxu1  ;;  %v2896_v41 = vpop.permute.xlu0 %2895 }
 0x3e8   :  { %3021 = vst.msk [vmem:[%s5580_s5 + $0x1b0] sm:$0xff] %vm180_vm1, %v2957_v52  ;;  %v2481_v21 = vadd.f32 %v2480_v24, %v1904_v60 }
 0x3e9   :  { %v2960_v34 = vadd.f32 %v2871_v11, %v2486_v44  ;;  %v1543_v28 = vpop.f32.mrb[138].mxu0 }
 0x3ea   :  { %v2959_v7 = vadd.f32 %v2866_v3, %v2481_v21  ;;  %v1929_v62 = vadd.f32 %v5646_v19, %v1543_v28  ;;  %v1545_v46 = vpop.f32.mrb[139].mxu0  ;;  %v3813_v18 = vpop.f32.mrb[154].mxu1 }
 0x3eb   :  { %3024 = vst.msk [vmem:[%s5580_s5 + $0x1c8] sm:$0xff] %vm180_vm1, %v2960_v34  ;;  %v2496_v0 = vadd.f32 %v3813_v18, %v1919_v29  ;;  %v2490_v14 = vpop.f32.mrb[155].mxu1 }
 0x3ec   :  { %3023 = vst.msk [vmem:[%s5580_s5 + $0x1c0] sm:$0xff] %vm180_vm1, %v2959_v7  ;;  %v2491_v50 = vadd.f32 %v2490_v14, %v1914_v20 }
 0x3ed   :  { %v2962_v60 = vadd.f32 %v2881_v12, %v2496_v0  ;;  %v1548_v27 = vpop.f32.mrb[140].mxu0 }
 0x3ee   :  { %v2961_v36 = vadd.f32 %v2876_v17, %v2491_v50  ;;  %v1934_v48 = vadd.f32 %v5647_v61, %v1548_v27  ;;  %v1550_v10 = vpop.f32.mrb[141].mxu0  ;;  %v3816_v26 = vpop.f32.mrb[156].mxu1 }
 0x3ef   :  { %3026 = vst.msk [vmem:[%s5580_s5 + $0x1d8] sm:$0xff] %vm180_vm1, %v2962_v60  ;;  %v2506_v2 = vadd.f32 %v3816_v26, %v1929_v62  ;;  %v2500_v6 = vpop.f32.mrb[157].mxu1 }
 0x3f0   :  { %3025 = vst.msk [vmem:[%s5580_s5 + $0x1d0] sm:$0xff] %vm180_vm1, %v2961_v36  ;;  %v2501_v32 = vadd.f32 %v2500_v6, %v1924_v25 }
 0x3f1   :  { %v2964_v51 = vadd.f32 %v2891_v49, %v2506_v2  ;;  %v1553_v16 = vpop.f32.mrb[142].mxu0 }
 0x3f2   :  { %v2963_v54 = vadd.f32 %v2886_v56, %v2501_v32  ;;  %v1939_v5 = vadd.f32 %v5648_v35, %v1553_v16  ;;  %v1555_v58 = vpop.f32.mrb[143].mxu0  ;;  %v3819_v1 = vpop.f32.mrb[158].mxu1 }
 0x3f3   :  { %3028 = vst.msk [vmem:[%s5580_s5 + $0x1e8] sm:$0xff] %vm180_vm1, %v2964_v51  ;;  %v2510_v38 = vpop.f32.mrb[159].mxu1 }
 0x3f4   :  { %3027 = vst.msk [vmem:[%s5580_s5 + $0x1e0] sm:$0xff] %vm180_vm1, %v2963_v54  ;;  %v2516_v8 = vadd.f32 %v3819_v1, %v1939_v5  ;;  %v2511_v13 = vadd.f32 %v2510_v38, %v1934_v48 }
 0x3f6   :  { %v2966_v20 = vadd.f32 %v2901_v63, %v2516_v8  ;;  %v2965_v9 = vadd.f32 %v2896_v41, %v2511_v13 }
 0x3f8   :  { %3030 = vst.msk [vmem:[%s5580_s5 + $0x1f8] sm:$0xff] %vm180_vm1, %v2966_v20  ;;  %3029 = vst.msk [vmem:[%s5580_s5 + $0x1f0] sm:$0xff] %vm180_vm1, %v2965_v9 }
 0x3f9   :  { %3035 = vsyncpa [#allocation4], 1 }

</bundles_post_ra>
